<compile_context>
chip_gen: v7x
topology: tpu7x:2x2x1
jax: 0.10.0
libtpu: 0.0.40
codegen_flags: <defaults>
</compile_context>

<pallas_src>
import functools

import jax
import jax.numpy as jnp
from jax import lax
from jax.experimental import pallas as pl
from jax.experimental.pallas import tpu as pltpu

_BIG = 3.0e38          # finite sentinel for masked max/min (squared-distance domain)
_PAD_NORM = 1.0e30     # row-norm sentinel for N-padding columns
_PAD_LABEL = -2147483648


def _round_up(a, b):
    return (a + b - 1) // b * b


def _triplet_kernel(x_i_ref, x_j_ref, sqi_ref, sqj_ref, li_ref, lj_ref, out_ref,
                    xxt_acc, ap2_acc, an2_acc, *, margin):
    i = pl.program_id(0)
    j = pl.program_id(1)
    k = pl.program_id(2)
    nj = pl.num_programs(1)
    nk = pl.num_programs(2)

    # New query-row block: reset the running hardest-positive / hardest-negative accs.
    @pl.when((j == 0) & (k == 0))
    def _():
        ap2_acc[...] = jnp.full_like(ap2_acc, -_BIG)
        an2_acc[...] = jnp.full_like(an2_acc, _BIG)

    # New candidate block: reset the (tm, tn) Gram-tile accumulator.
    @pl.when(k == 0)
    def _():
        xxt_acc[...] = jnp.zeros_like(xxt_acc)

    x_i = x_i_ref[k]          # (tm, tk)  k-chunk of the resident query panel (VMEM read)
    x_j = x_j_ref[...]        # (tn, tk)  streamed candidate chunk

    # x_i @ x_j^T on the MXU, f32 accumulation (operands are bf16 or f32 as streamed).
    xxt_acc[...] += lax.dot_general(
        x_i, x_j, (((1,), (1,)), ((), ())),
        preferred_element_type=jnp.float32)

    # Contraction over D finished for this (i, j) tile: fold squared distances into the
    # running row-max (positives) / row-min (negatives).  No N x N materialization.
    @pl.when(k == nk - 1)
    def _():
        tm = ap2_acc.shape[0]
        tn = x_j_ref.shape[0]
        # sqj is padded with +_PAD_NORM beyond the real N, so padded columns get a huge
        # d2 and can never become the hardest positive (label sentinel never matches) or
        # the hardest negative (huge value loses the min) -> no explicit valid mask.
        d2 = sqi_ref[...] + sqj_ref[...] - 2.0 * xxt_acc[...]          # (tm, tn)

        # Force the exact self-pair distance to 0 (PyTorch includes it as a positive at
        # distance ~0; also removes bf16 rounding error on the diagonal).
        row = i * tm + lax.broadcasted_iota(jnp.int32, (tm, tn), 0)
        col = j * tn + lax.broadcasted_iota(jnp.int32, (tm, tn), 1)
        d2 = jnp.where(row == col, 0.0, d2)

        same = li_ref[...] == lj_ref[...]                              # (tm, tn) bool
        pos = jnp.where(same, d2, -_BIG)
        neg = jnp.where(same, _BIG, d2)
        ap2_acc[...] = jnp.maximum(ap2_acc[...],
                                   jnp.max(pos, axis=1, keepdims=True))
        an2_acc[...] = jnp.minimum(an2_acc[...],
                                   jnp.min(neg, axis=1, keepdims=True))

    # All candidate blocks seen: finalize this row block (deferred clamp + sqrt).
    @pl.when((j == nj - 1) & (k == nk - 1))
    def _():
        dist_ap = jnp.sqrt(jnp.maximum(ap2_acc[...], 1e-12))           # (tm, 1)
        dist_an = jnp.sqrt(jnp.maximum(an2_acc[...], 1e-12))           # (tm, 1)
        loss = jnp.maximum(dist_ap - dist_an + margin, 0.0)            # (tm, 1)
        out_ref[...] = jnp.transpose(loss)                             # (1, tm) lane-dense


def triplet_loss(inputs, labels, margin=0.3, *, block_n=512, block_d=1024,
                 feature_dtype=jnp.bfloat16):
    """inputs: (N, D) features; labels: (N,) int class ids.  Returns scalar loss.

    Per-generation tuning (see review): v6e can push block_n to 768-1024 with a raised
    vmem limit; v7x/v5e are well served by block_n ~ 512 in bf16.
    """
    n, d = inputs.shape

    # Tile sizing: multiples of 128, clamped to the (128-rounded) problem size.
    block_n = max(128, _round_up(block_n, 128))
    block_d = max(128, _round_up(block_d, 128))
    n_128 = _round_up(n, 128)
    d_128 = _round_up(d, 128)
    block_n = min(block_n, n_128)
    block_d = min(block_d, d_128)
    # Keep >= 2 row blocks when there is enough work so the "parallel" i axis can shard
    # across the two v7x TensorCores.
    if n_128 >= 256 and _round_up(n, block_n) // block_n < 2:
        block_n = max(128, _round_up(n_128 // 2, 128))

    n_pad = _round_up(n, block_n)
    d_pad = _round_up(d, block_d)
    gi = n_pad // block_n
    gj = n_pad // block_n
    gk = d_pad // block_d

    # Wrapper-side precompute (all cheap O(N*D) XLA work):
    x32 = inputs.astype(jnp.float32)
    sq = jnp.sum(x32 * x32, axis=1)                                   # (n,) f32 norms
    x_pad = jnp.pad(x32, ((0, n_pad - n), (0, d_pad - d))).astype(feature_dtype)
    # (gi, gk, block_n, block_d) chunk layout: contiguous DMA tiles, and lets the kernel
    # index the resident query panel's k-chunk along the leading axis.
    x_chunks = x_pad.reshape(gi, block_n, gk, block_d).transpose(0, 2, 1, 3)

    sq_col = jnp.pad(sq, (0, n_pad - n)).reshape(n_pad, 1)
    sq_row = jnp.pad(sq, (0, n_pad - n),
                     constant_values=_PAD_NORM).reshape(1, n_pad)      # pad -> huge d2
    lbl = jnp.pad(labels.astype(jnp.int32), (0, n_pad - n),
                  constant_values=_PAD_LABEL)
    lbl_col = lbl.reshape(n_pad, 1)
    lbl_row = lbl.reshape(1, n_pad)

    itemsize = jnp.dtype(feature_dtype).itemsize
    vmem_need = (2 * block_n * d_pad * itemsize        # resident x_i panel (double-buf)
                 + 2 * block_n * block_d * itemsize    # streamed x_j chunk (double-buf)
                 + block_n * block_n * 4               # f32 Gram-tile accumulator
                 + 16 * block_n * 4)                   # norms/labels/acc/output vectors
    vmem_limit = int(min(100 << 20, max(32 << 20, 2 * vmem_need)))

    kernel = functools.partial(_triplet_kernel, margin=float(margin))

    per_row = pl.pallas_call(
        kernel,
        out_shape=jax.ShapeDtypeStruct((1, n_pad), jnp.float32),
        grid_spec=pltpu.PrefetchScalarGridSpec(
            num_scalar_prefetch=0,
            grid=(gi, gj, gk),
            in_specs=[
                # Query panel: all gk chunks of row-block i, constant in (j, k) -> DMA'd
                # from HBM exactly once per row block (resident across the inner loops).
                pl.BlockSpec((None, gk, block_n, block_d),
                             lambda i, j, k: (i, 0, 0, 0)),
                # Candidate chunk: streamed per (j, k).
                pl.BlockSpec((None, None, block_n, block_d),
                             lambda i, j, k: (j, k, 0, 0)),
                pl.BlockSpec((block_n, 1), lambda i, j, k: (i, 0)),    # ||x_i||^2 col
                pl.BlockSpec((1, block_n), lambda i, j, k: (0, j)),    # ||x_j||^2 row
                pl.BlockSpec((block_n, 1), lambda i, j, k: (i, 0)),    # labels (col)
                pl.BlockSpec((1, block_n), lambda i, j, k: (0, j)),    # labels (row)
            ],
            out_specs=pl.BlockSpec((1, block_n), lambda i, j, k: (0, i)),
            scratch_shapes=[
                pltpu.VMEM((block_n, block_n), jnp.float32),  # x_i @ x_j^T accumulator
                pltpu.VMEM((block_n, 1), jnp.float32),        # running max dist^2 (pos)
                pltpu.VMEM((block_n, 1), jnp.float32),        # running min dist^2 (neg)
            ],
        ),
        compiler_params=pltpu.CompilerParams(
            dimension_semantics=("parallel", "arbitrary", "arbitrary"),
            vmem_limit_bytes=vmem_limit),
        cost_estimate=pl.CostEstimate(
            flops=2 * n_pad * n_pad * d_pad,
            transcendentals=0,
            # x_i panel read once (n_pad*d_pad), x_j streamed gi times, small vectors.
            bytes_accessed=itemsize * n_pad * d_pad * (1 + gi) + 4 * 6 * n_pad),
    )(x_chunks, x_chunks, sq_col, sq_row, lbl_col, lbl_row)

    return jnp.mean(per_row[0, :n])


def _reference_triplet_loss(inputs, labels, margin=0.3):
    """Pure-JAX reference mirroring the PyTorch module (accurate f32 matmul)."""
    x = inputs.astype(jnp.float32)
    sq = jnp.sum(x * x, axis=1, keepdims=True)
    xxt = lax.dot_general(x, x, (((1,), (1,)), ((), ())),
                          precision=lax.Precision.HIGHEST,
                          preferred_element_type=jnp.float32)
    dist2 = sq + sq.T - 2.0 * xxt
    dist = jnp.sqrt(jnp.maximum(dist2, 1e-12))
    same = labels[:, None] == labels[None, :]
    dist_ap = jnp.max(jnp.where(same, dist, -jnp.inf), axis=1)
    dist_an = jnp.min(jnp.where(same, jnp.inf, dist), axis=1)
    return jnp.mean(jnp.maximum(dist_ap - dist_an + margin, 0.0))


if __name__ == "__main__":
    key = jax.random.PRNGKey(0)
    k1, k2 = jax.random.split(key)

    # Test 1: small unaligned shapes (exercises N/D zero-padding), f32 streaming path.
    n1, d1 = 32, 48
    x1 = jax.random.normal(k1, (n1, d1), dtype=jnp.float32)
    y1 = jnp.arange(n1, dtype=jnp.int32) % 5
    loss1 = jax.block_until_ready(
        triplet_loss(x1, y1, margin=0.3, feature_dtype=jnp.float32))
    ref1 = _reference_triplet_loss(x1, y1, margin=0.3)
    assert bool(jnp.isfinite(loss1))
    assert jnp.allclose(loss1, ref1, atol=1e-2, rtol=1e-2), (loss1, ref1)

    # Test 2: multi-block grid (2x2 row/col blocks, 2 feature chunks -> exercises the
    # resident-panel k indexing), f32 streaming path.
    n2, d2 = 160, 200
    x2 = jax.random.normal(k2, (n2, d2), dtype=jnp.float32)
    y2 = jnp.arange(n2, dtype=jnp.int32) % 7
    loss2 = jax.block_until_ready(
        triplet_loss(x2, y2, margin=0.3, block_n=128, block_d=128,
                     feature_dtype=jnp.float32))
    ref2 = _reference_triplet_loss(x2, y2, margin=0.3)
    assert jnp.allclose(loss2, ref2, atol=1e-2, rtol=1e-2), (loss2, ref2)

    # Test 3: default bf16 streaming (v5e/v6e/v7x fast path), f32 accumulation.
    loss3 = jax.block_until_ready(
        triplet_loss(x2, y2, margin=0.3, block_n=128, block_d=128))
    assert jnp.allclose(loss3, ref2, atol=5e-2, rtol=5e-2), (loss3, ref2)

    print("KERNEL_OK")
</pallas_src>

<mosaic_0001>
module attributes {stable_mosaic.version = 11 : i64} {
  func.func @_triplet_kernel(%arg0: i32, %arg1: i32, %arg2: i32, %arg3: memref<1x1x128x128xf32, #tpu.memory_space<vmem>>, %arg4: memref<1x1x128x128xf32, #tpu.memory_space<vmem>>, %arg5: memref<128x1xf32, #tpu.memory_space<vmem>>, %arg6: memref<1x128xf32, #tpu.memory_space<vmem>>, %arg7: memref<128x1xi32, #tpu.memory_space<vmem>>, %arg8: memref<1x128xi32, #tpu.memory_space<vmem>>, %arg9: memref<1x128xf32, #tpu.memory_space<vmem>>, %arg10: memref<128x128xf32, #tpu.memory_space<vmem>>, %arg11: memref<128x1xf32, #tpu.memory_space<vmem>>, %arg12: memref<128x1xf32, #tpu.memory_space<vmem>>) attributes {dimension_semantics = [#tpu.dimension_semantics<parallel>, #tpu.dimension_semantics<arbitrary>, #tpu.dimension_semantics<arbitrary>], iteration_bounds = array<i64: 1, 1, 1>, scalar_prefetch = 0 : i64, scratch_operands = 3 : i64, tpu.core_type = #tpu.core_type<tc>, window_params = [{transform_indices = @transform_0, window_bounds = array<i64: 1, 1, 128, 128>}, {transform_indices = @transform_1, window_bounds = array<i64: 1, 1, 128, 128>}, {transform_indices = @transform_2, window_bounds = array<i64: 128, 1>}, {transform_indices = @transform_3, window_bounds = array<i64: 1, 128>}, {transform_indices = @transform_4, window_bounds = array<i64: 128, 1>}, {transform_indices = @transform_5, window_bounds = array<i64: 1, 128>}, {transform_indices = @transform_6, window_bounds = array<i64: 1, 128>}]} {
    %c0_i32 = arith.constant 0 : i32
    %0 = arith.cmpi eq, %arg1, %c0_i32 : i32
    %c0_i32_0 = arith.constant 0 : i32
    %1 = arith.cmpi eq, %arg2, %c0_i32_0 : i32
    %2 = arith.andi %0, %1 : i1
    %3 = arith.extui %2 : i1 to i32
    %c0_i32_1 = arith.constant 0 : i32
    %4 = arith.cmpi ne, %3, %c0_i32_1 : i32
    scf.if %4 {
      %cst_19 = arith.constant -3.000000e+38 : f32
      %25 = vector.broadcast %cst_19 : f32 to vector<128x1xf32>
      %c0_20 = arith.constant 0 : index
      %c0_21 = arith.constant 0 : index
      %26 = vector.load %arg11[%c0_20, %c0_21] : memref<128x1xf32, #tpu.memory_space<vmem>>, vector<128x1xf32>
      tpu.vector_store %arg11[%c0_20, %c0_21], %25 {strides = array<i32>} : memref<128x1xf32, #tpu.memory_space<vmem>>, vector<128x1xf32>,
      %cst_22 = arith.constant 3.000000e+38 : f32
      %27 = vector.broadcast %cst_22 : f32 to vector<128x1xf32>
      %c0_23 = arith.constant 0 : index
      %c0_24 = arith.constant 0 : index
      %28 = vector.load %arg12[%c0_23, %c0_24] : memref<128x1xf32, #tpu.memory_space<vmem>>, vector<128x1xf32>
      tpu.vector_store %arg12[%c0_23, %c0_24], %27 {strides = array<i32>} : memref<128x1xf32, #tpu.memory_space<vmem>>, vector<128x1xf32>,
    } else {
    }
    %c0_i32_2 = arith.constant 0 : i32
    %5 = arith.cmpi eq, %arg2, %c0_i32_2 : i32
    %6 = arith.extui %5 : i1 to i32
    %c0_i32_3 = arith.constant 0 : i32
    %7 = arith.cmpi ne, %6, %c0_i32_3 : i32
    scf.if %7 {
      %cst_19 = arith.constant 0.000000e+00 : f32
      %25 = vector.broadcast %cst_19 : f32 to vector<128x128xf32>
      %c0_20 = arith.constant 0 : index
      %c0_21 = arith.constant 0 : index
      %26 = vector.load %arg10[%c0_20, %c0_21] : memref<128x128xf32, #tpu.memory_space<vmem>>, vector<128x128xf32>
      tpu.vector_store %arg10[%c0_20, %c0_21], %25 {strides = array<i32>} : memref<128x128xf32, #tpu.memory_space<vmem>>, vector<128x128xf32>,
    } else {
    }
    %c0 = arith.constant 0 : index
    %8 = arith.index_cast %arg2 : i32 to index
    %c0_4 = arith.constant 0 : index
    %c0_5 = arith.constant 0 : index
    %9 = vector.load %arg3[%c0, %8, %c0_4, %c0_5] : memref<1x1x128x128xf32, #tpu.memory_space<vmem>>, vector<1x1x128x128xf32>
    %10 = vector.shape_cast %9 : vector<1x1x128x128xf32> to vector<128x128xf32>
    %c0_6 = arith.constant 0 : index
    %c0_7 = arith.constant 0 : index
    %c0_8 = arith.constant 0 : index
    %c0_9 = arith.constant 0 : index
    %11 = vector.load %arg4[%c0_6, %c0_7, %c0_8, %c0_9] : memref<1x1x128x128xf32, #tpu.memory_space<vmem>>, vector<1x1x128x128xf32>
    %12 = vector.shape_cast %11 : vector<1x1x128x128xf32> to vector<128x128xf32>
    %c0_10 = arith.constant 0 : index
    %c0_11 = arith.constant 0 : index
    %13 = vector.load %arg10[%c0_10, %c0_11] : memref<128x128xf32, #tpu.memory_space<vmem>>, vector<128x128xf32>
    %cst = arith.constant dense<0.000000e+00> : vector<128x128xf32>
    %14 = tpu.matmul %10, %12, %cst {dimension_numbers = #tpu.dot_dimension_numbers<[1], [1], [0], [0], [0, 0, 1, 0], [], []>} : vector<128x128xf32>, vector<128x128xf32>, vector<128x128xf32> -> vector<128x128xf32>
    %15 = arith.addf %13, %14 : vector<128x128xf32>
    %c0_12 = arith.constant 0 : index
    %c0_13 = arith.constant 0 : index
    %16 = vector.load %arg10[%c0_12, %c0_13] : memref<128x128xf32, #tpu.memory_space<vmem>>, vector<128x128xf32>
    tpu.vector_store %arg10[%c0_12, %c0_13], %15 {strides = array<i32>} : memref<128x128xf32, #tpu.memory_space<vmem>>, vector<128x128xf32>,
    %c0_i32_14 = arith.constant 0 : i32
    %17 = arith.cmpi eq, %arg2, %c0_i32_14 : i32
    %18 = arith.extui %17 : i1 to i32
    %c0_i32_15 = arith.constant 0 : i32
    %19 = arith.cmpi ne, %18, %c0_i32_15 : i32
    scf.if %19 {
      %c0_19 = arith.constant 0 : index
      %c0_20 = arith.constant 0 : index
      %25 = vector.load %arg5[%c0_19, %c0_20] : memref<128x1xf32, #tpu.memory_space<vmem>>, vector<128x1xf32>
      %c0_21 = arith.constant 0 : index
      %c0_22 = arith.constant 0 : index
      %26 = vector.load %arg6[%c0_21, %c0_22] : memref<1x128xf32, #tpu.memory_space<vmem>>, vector<1x128xf32>
      %27 = vector.broadcast %25 : vector<128x1xf32> to vector<128x128xf32>
      %28 = vector.broadcast %26 : vector<1x128xf32> to vector<128x128xf32>
      %29 = arith.addf %27, %28 : vector<128x128xf32>
      %c0_23 = arith.constant 0 : index
      %c0_24 = arith.constant 0 : index
      %30 = vector.load %arg10[%c0_23, %c0_24] : memref<128x128xf32, #tpu.memory_space<vmem>>, vector<128x128xf32>
      %cst_25 = arith.constant 2.000000e+00 : f32
      %31 = vector.broadcast %cst_25 : f32 to vector<128x128xf32>
      %32 = arith.mulf %31, %30 : vector<128x128xf32>
      %33 = arith.subf %29, %32 : vector<128x128xf32>
      %c128_i32 = arith.constant 128 : i32
      %34 = arith.muli %arg0, %c128_i32 : i32
      %35 = tpu.iota {dimensions = array<i32: 0>} : vector<128x128xi32>
      %36 = vector.broadcast %34 : i32 to vector<128x128xi32>
      %37 = arith.addi %36, %35 : vector<128x128xi32>
      %c128_i32_26 = arith.constant 128 : i32
      %38 = arith.muli %arg1, %c128_i32_26 : i32
      %39 = tpu.iota {dimensions = array<i32: 1>} : vector<128x128xi32>
      %40 = vector.broadcast %38 : i32 to vector<128x128xi32>
      %41 = arith.addi %40, %39 : vector<128x128xi32>
      %42 = arith.cmpi eq, %37, %41 : vector<128x128xi32>
      %cst_27 = arith.constant 0.000000e+00 : f32
      %43 = vector.broadcast %cst_27 : f32 to vector<128x128xf32>
      %44 = arith.select %42, %43, %33 : vector<128x128xi1>, vector<128x128xf32>
      %c0_28 = arith.constant 0 : index
      %c0_29 = arith.constant 0 : index
      %45 = vector.load %arg7[%c0_28, %c0_29] : memref<128x1xi32, #tpu.memory_space<vmem>>, vector<128x1xi32>
      %c0_30 = arith.constant 0 : index
      %c0_31 = arith.constant 0 : index
      %46 = vector.load %arg8[%c0_30, %c0_31] : memref<1x128xi32, #tpu.memory_space<vmem>>, vector<1x128xi32>
      %47 = vector.broadcast %45 : vector<128x1xi32> to vector<128x128xi32>
      %48 = vector.broadcast %46 : vector<1x128xi32> to vector<128x128xi32>
      %49 = arith.cmpi eq, %47, %48 : vector<128x128xi32>
      %cst_32 = arith.constant -3.000000e+38 : f32
      %50 = vector.broadcast %cst_32 : f32 to vector<128x128xf32>
      %51 = arith.select %49, %44, %50 : vector<128x128xi1>, vector<128x128xf32>
      %cst_33 = arith.constant 3.000000e+38 : f32
      %52 = vector.broadcast %cst_33 : f32 to vector<128x128xf32>
      %53 = arith.select %49, %52, %44 : vector<128x128xi1>, vector<128x128xf32>
      %c0_34 = arith.constant 0 : index
      %c0_35 = arith.constant 0 : index
      %54 = vector.load %arg11[%c0_34, %c0_35] : memref<128x1xf32, #tpu.memory_space<vmem>>, vector<128x1xf32>
      %cst_36 = arith.constant dense<0xFF800000> : vector<128xf32>
      %55 = vector.multi_reduction <maximumf>, %51, %cst_36 [1] : vector<128x128xf32> to vector<128xf32>
      %56 = vector.shape_cast %55 : vector<128xf32> to vector<128x1xf32>
      %57 = arith.maximumf %54, %56 : vector<128x1xf32>
      %c0_37 = arith.constant 0 : index
      %c0_38 = arith.constant 0 : index
      %58 = vector.load %arg11[%c0_37, %c0_38] : memref<128x1xf32, #tpu.memory_space<vmem>>, vector<128x1xf32>
      tpu.vector_store %arg11[%c0_37, %c0_38], %57 {strides = array<i32>} : memref<128x1xf32, #tpu.memory_space<vmem>>, vector<128x1xf32>,
      %c0_39 = arith.constant 0 : index
      %c0_40 = arith.constant 0 : index
      %59 = vector.load %arg12[%c0_39, %c0_40] : memref<128x1xf32, #tpu.memory_space<vmem>>, vector<128x1xf32>
      %cst_41 = arith.constant dense<0x7F800000> : vector<128xf32>
      %60 = vector.multi_reduction <minimumf>, %53, %cst_41 [1] : vector<128x128xf32> to vector<128xf32>
      %61 = vector.shape_cast %60 : vector<128xf32> to vector<128x1xf32>
      %62 = arith.minimumf %59, %61 : vector<128x1xf32>
      %c0_42 = arith.constant 0 : index
      %c0_43 = arith.constant 0 : index
      %63 = vector.load %arg12[%c0_42, %c0_43] : memref<128x1xf32, #tpu.memory_space<vmem>>, vector<128x1xf32>
      tpu.vector_store %arg12[%c0_42, %c0_43], %62 {strides = array<i32>} : memref<128x1xf32, #tpu.memory_space<vmem>>, vector<128x1xf32>,
    } else {
    }
    %c0_i32_16 = arith.constant 0 : i32
    %20 = arith.cmpi eq, %arg1, %c0_i32_16 : i32
    %c0_i32_17 = arith.constant 0 : i32
    %21 = arith.cmpi eq, %arg2, %c0_i32_17 : i32
    %22 = arith.andi %20, %21 : i1
    %23 = arith.extui %22 : i1 to i32
    %c0_i32_18 = arith.constant 0 : i32
    %24 = arith.cmpi ne, %23, %c0_i32_18 : i32
    scf.if %24 {
      %c0_19 = arith.constant 0 : index
      %c0_20 = arith.constant 0 : index
      %25 = vector.load %arg11[%c0_19, %c0_20] : memref<128x1xf32, #tpu.memory_space<vmem>>, vector<128x1xf32>
      %cst_21 = arith.constant 9.99999996E-13 : f32
      %26 = vector.broadcast %cst_21 : f32 to vector<128x1xf32>
      %27 = arith.maximumf %25, %26 : vector<128x1xf32>
      %28 = math.sqrt %27 : vector<128x1xf32>
      %c0_22 = arith.constant 0 : index
      %c0_23 = arith.constant 0 : index
      %29 = vector.load %arg12[%c0_22, %c0_23] : memref<128x1xf32, #tpu.memory_space<vmem>>, vector<128x1xf32>
      %cst_24 = arith.constant 9.99999996E-13 : f32
      %30 = vector.broadcast %cst_24 : f32 to vector<128x1xf32>
      %31 = arith.maximumf %29, %30 : vector<128x1xf32>
      %32 = math.sqrt %31 : vector<128x1xf32>
      %33 = arith.subf %28, %32 : vector<128x1xf32>
      %cst_25 = arith.constant 3.000000e-01 : f32
      %34 = vector.broadcast %cst_25 : f32 to vector<128x1xf32>
      %35 = arith.addf %33, %34 : vector<128x1xf32>
      %cst_26 = arith.constant 0.000000e+00 : f32
      %36 = vector.broadcast %cst_26 : f32 to vector<128x1xf32>
      %37 = arith.maximumf %35, %36 : vector<128x1xf32>
      %38 = tpu.transpose %37, [1, 0] : vector<128x1xf32> -> vector<1x128xf32>
      %c0_27 = arith.constant 0 : index
      %c0_28 = arith.constant 0 : index
      %39 = vector.load %arg9[%c0_27, %c0_28] : memref<1x128xf32, #tpu.memory_space<vmem>>, vector<1x128xf32>
      tpu.vector_store %arg9[%c0_27, %c0_28], %38 {strides = array<i32>} : memref<1x128xf32, #tpu.memory_space<vmem>>, vector<1x128xf32>,
    } else {
    }
    return
  }
  func.func @transform_0(%arg0: i32, %arg1: i32, %arg2: i32) -> (i32, i32, i32, i32) {
    %c0_i32 = arith.constant 0 : i32
    %c0_i32_0 = arith.constant 0 : i32
    %c0_i32_1 = arith.constant 0 : i32
    %c0_i32_2 = arith.constant 0 : i32
    return %arg0, %c0_i32, %c0_i32_0, %c0_i32_1 : i32, i32, i32, i32
  }
  func.func @transform_1(%arg0: i32, %arg1: i32, %arg2: i32) -> (i32, i32, i32, i32) {
    %c0_i32 = arith.constant 0 : i32
    %c0_i32_0 = arith.constant 0 : i32
    %c0_i32_1 = arith.constant 0 : i32
    return %arg1, %arg2, %c0_i32, %c0_i32_0 : i32, i32, i32, i32
  }
  func.func @transform_2(%arg0: i32, %arg1: i32, %arg2: i32) -> (i32, i32) {
    %c0_i32 = arith.constant 0 : i32
    %c0_i32_0 = arith.constant 0 : i32
    return %arg0, %c0_i32 : i32, i32
  }
  func.func @transform_3(%arg0: i32, %arg1: i32, %arg2: i32) -> (i32, i32) {
    %c0_i32 = arith.constant 0 : i32
    %c0_i32_0 = arith.constant 0 : i32
    return %c0_i32, %arg1 : i32, i32
  }
  func.func @transform_4(%arg0: i32, %arg1: i32, %arg2: i32) -> (i32, i32) {
    %c0_i32 = arith.constant 0 : i32
    %c0_i32_0 = arith.constant 0 : i32
    return %arg0, %c0_i32 : i32, i32
  }
  func.func @transform_5(%arg0: i32, %arg1: i32, %arg2: i32) -> (i32, i32) {
    %c0_i32 = arith.constant 0 : i32
    %c0_i32_0 = arith.constant 0 : i32
    return %c0_i32, %arg1 : i32, i32
  }
  func.func @transform_6(%arg0: i32, %arg1: i32, %arg2: i32) -> (i32, i32) {
    %c0_i32 = arith.constant 0 : i32
    %c0_i32_0 = arith.constant 0 : i32
    return %c0_i32, %arg0 : i32, i32
  }
}

</mosaic_0001>

<bundles_post_ra>
// kernel: tpu_custom_call.1
= control target key start
LH: loop header
LB: loop body
LE: loop exit
PB: predicated region body
PF: predicated region fallthrough
CT: control target
= control target key end

     0   :  { %v1446_v5 = vmov 0   ;;  %s2330_s0 = inlined_call_operand.vmem [shape: f32[1,1,128,128], index: 0, kind: input, shape index: {}]   ;;  %s2331_s1 = inlined_call_operand.vmem [shape: f32[1,1,128,128], index: 1, kind: input, shape index: {}]   ;;  %s2332_s2 = inlined_call_operand.vmem [shape: f32[128,1], index: 2, kind: input, shape index: {}]   ;;  %s2333_s3 = inlined_call_operand.vmem [shape: f32[1,128], index: 3, kind: input, shape index: {}]   ;;  %s2334_s4 = inlined_call_operand.vmem [shape: s32[128,1], index: 4, kind: input, shape index: {}]   ;;  %s2335_s5 = inlined_call_operand.vmem [shape: s32[1,128], index: 5, kind: input, shape index: {}]   ;;  %s2336_s6 = inlined_call_operand.hbm [shape: f32[1,128], index: 6, kind: output, shape index: {}]  }
   0x1   :  { %v100_v0 = vld [vmem:[%s2331_s1] sm:$0xff]  ;;  %v101_v1 = vld [vmem:[%s2331_s1 + $0x8] sm:$0xff]  ;;  %v102_v2 = vld [vmem:[%s2331_s1 + $0x10] sm:$0xff]  ;;  %1357 = vset.pattern.permute.xlu1 %v1446_v5  ;;  %1356 = vset.pattern.permute.xlu0 %v1446_v5 }
   0x2   :  { %v1304_v3 = vpack.c.bf16 %v101_v1, %v100_v0  ;;  %v103_v4 = vld [vmem:[%s2331_s1 + $0x18] sm:$0xff]  ;;  %v314_v7 = vld [vmem:[%s2332_s2 + $0x10] sm:$0xff]  ;;  %v104_v8 = vld [vmem:[%s2331_s1 + $0x20] sm:$0xff] }
   0x3   :  { %v1308_v6 = vpack.c.bf16 %v103_v4, %v102_v2  ;;  %v105_v9 = vld [vmem:[%s2331_s1 + $0x28] sm:$0xff]  ;;  %341 = vperm.xlu1 %1357, %v314_v7   ;;  %v312_v10 = vld [vmem:[%s2332_s2] sm:$0xff]  ;;  %v315_v13 = vld [vmem:[%s2332_s2 + $0x18] sm:$0xff] }
   0x4   :  { %1305 = vmatprep.subr.bf16.mxu0 %v1304_v3  ;;  %1336 = vmatprep.subr.bf16.mxu1 %v1304_v3  ;;  %v84_v11 = vld [vmem:[%s2330_s0] sm:$0xff]  ;;  %v313_v14 = vld [vmem:[%s2332_s2 + $0x8] sm:$0xff]  ;;  %v1312_v15 = vpack.c.bf16 %v105_v9, %v104_v8  ;;  %v106_v18 = vld [vmem:[%s2331_s1 + $0x30] sm:$0xff] }
   0x5   :  { %1307 = vmatpush3.bf16.xpose.msra.mxu0 %v1304_v3  ;;  %1344 = vmatpush3.bf16.xpose.msra.mxu1 %v1304_v3  ;;  %v92_v12 = vld [vmem:[%s2330_s0 + $0x40] sm:$0xff]  ;;  %v317_v16 = vld [vmem:[%s2332_s2 + $0x28] sm:$0xff]  ;;  %v107_v19 = vld [vmem:[%s2331_s1 + $0x38] sm:$0xff] }
   0x6   :  { %1309 = vmatprep.subr.bf16.mxu0 %v1308_v6  ;;  %1337 = vmatprep.subr.bf16.mxu1 %v1308_v6  ;;  %v316_v17 = vld [vmem:[%s2332_s2 + $0x20] sm:$0xff]  ;;  %v552_v20 = vld [vmem:[%s2334_s4 + $0x8] sm:$0xff]  ;;  %v1316_v22 = vpack.c.bf16 %v107_v19, %v106_v18  ;;  %v554_v23 = vld [vmem:[%s2334_s4 + $0x18] sm:$0xff] }
   0x7   :  { %331 = vperm.xlu0 %1356, %v312_v10   ;;  %1280 = vmatprep.mubr.f32.mxu0 %v84_v11  ;;  %v551_v21 = vld [vmem:[%s2334_s4] sm:$0xff]  ;;  %v553_v24 = vld [vmem:[%s2334_s4 + $0x10] sm:$0xff]  ;;  %v109_v26 = vld [vmem:[%s2331_s1 + $0x48] sm:$0xff] }
   0x8   :  { %1292 = vmatprep.mubr.f32.mxu1 %v92_v12  ;;  %346 = vperm.xlu1 %1357, %v315_v13   ;;  %v108_v25 = vld [vmem:[%s2331_s1 + $0x40] sm:$0xff] }
   0xb   :  { %336 = vperm.xlu0 %1356, %v313_v14  }
   0xc   :  { %356 = vperm.xlu1 %1357, %v317_v16  }
   0xd   :  { %1311 = vmatpush3.bf16.xpose.msra.mxu0 %v1308_v6  ;;  %1345 = vmatpush3.bf16.xpose.msra.mxu1 %v1308_v6 }
   0xe   :  { %1313 = vmatprep.subr.bf16.mxu0 %v1312_v15  ;;  %1338 = vmatprep.subr.bf16.mxu1 %v1312_v15 }
   0xf   :  { %351 = vperm.xlu0 %1356, %v316_v17  }
  0x10   :  { %572 = vperm.xlu1 %1357, %v552_v20  }
  0x13   :  { %569 = vperm.xlu0 %1356, %v551_v21  }
  0x14   :  { %578 = vperm.xlu1 %1357, %v554_v23  }
  0x15   :  { %1315 = vmatpush3.bf16.xpose.msra.mxu0 %v1312_v15  ;;  %1346 = vmatpush3.bf16.xpose.msra.mxu1 %v1312_v15 }
  0x16   :  { %1317 = vmatprep.subr.bf16.mxu0 %v1316_v22  ;;  %1339 = vmatprep.subr.bf16.mxu1 %v1316_v22 }
  0x17   :  { %11 = vsyncpa [#allocation6], 0  ;;  %v555_v27 = vld [vmem:[%s2334_s4 + $0x20] sm:$0xff]  ;;  %575 = vperm.xlu0 %1356, %v553_v24   ;;  %v318_v28 = vld [vmem:[%s2332_s2 + $0x30] sm:$0xff]  ;;  %v1320_v29 = vpack.c.bf16 %v109_v26, %v108_v25  ;;  %v480_v24 = vlaneseq  ;;  %vm30_vm14 = vcmask 7168  }
  0x18   :  { %581 = vperm.xlu1 %1357, %v555_v27   ;;  %v556_v30 = vld [vmem:[%s2334_s4 + $0x28] sm:$0xff]  ;;  %v319_v31 = vld [vmem:[%s2332_s2 + $0x38] sm:$0xff]  ;;  %v110_v32 = vld [vmem:[%s2331_s1 + $0x50] sm:$0xff] }
  0x19   :  { %v111_v33 = vld [vmem:[%s2331_s1 + $0x58] sm:$0xff]  ;;  %v557_v34 = vld [vmem:[%s2334_s4 + $0x30] sm:$0xff]  ;;  %v320_v35 = vld [vmem:[%s2332_s2 + $0x40] sm:$0xff]  ;;  %v1705_v27 = vshrl.u32 %v480_v24, 7 }
  0x1a   :  { %v1324_v36 = vpack.c.bf16 %v111_v33, %v110_v32  ;;  %v558_v37 = vld [vmem:[%s2334_s4 + $0x38] sm:$0xff]  ;;  %v321_v38 = vld [vmem:[%s2332_s2 + $0x48] sm:$0xff]  ;;  %v112_v39 = vld [vmem:[%s2331_s1 + $0x60] sm:$0xff] }
  0x1b   :  { %361 = vperm.xlu0 %1356, %v318_v28   ;;  %v113_v40 = vld [vmem:[%s2331_s1 + $0x68] sm:$0xff]  ;;  %v559_v41 = vld [vmem:[%s2334_s4 + $0x40] sm:$0xff]  ;;  %v322_v42 = vld [vmem:[%s2332_s2 + $0x50] sm:$0xff]  ;;  %v482_v32 = vadd.s32 8, %v1705_v27 }
  0x1c   :  { %584 = vperm.xlu1 %1357, %v556_v30   ;;  %v1328_v43 = vpack.c.bf16 %v113_v40, %v112_v39  ;;  %v560_v44 = vld [vmem:[%s2334_s4 + $0x48] sm:$0xff]  ;;  %v323_v45 = vld [vmem:[%s2332_s2 + $0x58] sm:$0xff]  ;;  %v114_v46 = vld [vmem:[%s2331_s1 + $0x70] sm:$0xff]  ;;  %v490_v30 = vadd.s32 72, %v1705_v27 }
  0x1d   :  { %1319 = vmatpush3.bf16.xpose.msra.mxu0 %v1316_v22  ;;  %1347 = vmatpush3.bf16.xpose.msra.mxu1 %v1316_v22  ;;  %v115_v47 = vld [vmem:[%s2331_s1 + $0x78] sm:$0xff]  ;;  %v561_v48 = vld [vmem:[%s2334_s4 + $0x50] sm:$0xff]  ;;  %v324_v49 = vld [vmem:[%s2332_s2 + $0x60] sm:$0xff] }
  0x1e   :  { %1321 = vmatprep.subr.bf16.mxu0 %v1320_v29  ;;  %1340 = vmatprep.subr.bf16.mxu1 %v1320_v29  ;;  %v1332_v50 = vpack.c.bf16 %v115_v47, %v114_v46  ;;  %v562_v51 = vld [vmem:[%s2334_s4 + $0x58] sm:$0xff]  ;;  %v325_v52 = vld [vmem:[%s2332_s2 + $0x68] sm:$0xff]  ;;  %v563_v53 = vld [vmem:[%s2334_s4 + $0x60] sm:$0xff] }
  0x1f   :  { %366 = vperm.xlu0 %1356, %v319_v31   ;;  %v326_v54 = vld [vmem:[%s2332_s2 + $0x70] sm:$0xff]  ;;  %v564_v55 = vld [vmem:[%s2334_s4 + $0x68] sm:$0xff]  ;;  %v327_v56 = vld [vmem:[%s2332_s2 + $0x78] sm:$0xff]  ;;  %v1710_v31 = vand.u32 127, %v480_v24 }
  0x20   :  { %587 = vperm.xlu1 %1357, %v557_v34   ;;  %v566_v57 = vld [vmem:[%s2334_s4 + $0x78] sm:$0xff]  ;;  %v85_v58 = vld [vmem:[%s2330_s0 + $0x8] sm:$0xff]  ;;  %v86_v60 = vld [vmem:[%s2330_s0 + $0x10] sm:$0xff] }
  0x21   :  { %v93_v59 = vld [vmem:[%s2330_s0 + $0x48] sm:$0xff]  ;;  %v94_v61 = vld [vmem:[%s2330_s0 + $0x50] sm:$0xff]  ;;  %v87_v63 = vld [vmem:[%s2330_s0 + $0x18] sm:$0xff]  ;;  %vm528_vm0 = vcmp.eq.s32.totalorder %v490_v30, %v1710_v31  ;;  %vm520_vm1 = vcmp.eq.s32.totalorder %v482_v32, %v1710_v31  ;;  %vm519_vm3 = vcmp.eq.s32.totalorder %v1705_v27, %v1710_v31 }
  0x22   :  { %v565_v62 = vld [vmem:[%s2334_s4 + $0x70] sm:$0xff]  ;;  %v95_v0 = vld [vmem:[%s2330_s0 + $0x58] sm:$0xff]  ;;  %v88_v1 = vld [vmem:[%s2330_s0 + $0x20] sm:$0xff] }
  0x23   :  { %371 = vperm.xlu0 %1356, %v320_v35   ;;  %v96_v2 = vld [vmem:[%s2330_s0 + $0x60] sm:$0xff]  ;;  %v89_v3 = vld [vmem:[%s2330_s0 + $0x28] sm:$0xff]  ;;  %v90_v5 = vld [vmem:[%s2330_s0 + $0x30] sm:$0xff] }
  0x24   :  { %590 = vperm.xlu1 %1357, %v558_v37   ;;  %v97_v4 = vld [vmem:[%s2330_s0 + $0x68] sm:$0xff]  ;;  %v98_v6 = vld [vmem:[%s2330_s0 + $0x70] sm:$0xff]  ;;  %v91_v7 = vld [vmem:[%s2330_s0 + $0x38] sm:$0xff] }
  0x25   :  { %1323 = vmatpush3.bf16.xpose.msra.mxu0 %v1320_v29  ;;  %1348 = vmatpush3.bf16.xpose.msra.mxu1 %v1320_v29  ;;  %v99_v8 = vld [vmem:[%s2330_s0 + $0x78] sm:$0xff]  ;;  %v1716_v33 = vld [vmem:[%s2333_s3] ss:$0 sm:$0xff]  ;;  %s1449_s3 = smov [#allocation5]  }
  0x26   :  { %1325 = vmatprep.subr.bf16.mxu0 %v1324_v36  ;;  %1341 = vmatprep.subr.bf16.mxu1 %v1324_v36  ;;  %v1722_v37 = vld [vmem:[%s2335_s5] ss:$0 sm:$0xff]  ;;  %s1206_s5 = sshll.u32 %s1449_s3, 4  ;;  %s1207_s5 = int_to_ptr.vmem [resolvable:$true] %s1206_s5 }
  0x27   :  { %376 = vperm.xlu0 %1356, %v321_v38   ;;  %s1422_s28 = scalar_lea.vmem %s1207_s5, 16  ;;  %s1426_s2 = scalar_lea.vmem %s1207_s5, 32 }
  0x28   :  { %593 = vperm.xlu1 %1357, %v559_v41   ;;  %p1423_p0 = scmp.ne.s32.totalorder %s1207_s5, %s1422_s28  ;;  %p1427_p1 = scmp.lt.s32.totalorder %s1207_s5, %s1207_s5 }
  0x29   :  { %p1428_p2 = scmp.lt.s32.totalorder %s1426_s2, %s1422_s28 }
  0x2b   :  { %381 = vperm.xlu0 %1356, %v322_v42   ;;  %p1429_p3 = por %p1428_p2, %p1427_p1 }
  0x2c   :  { %596 = vperm.xlu1 %1357, %v560_v44  }
  0x2d   :  { %1327 = vmatpush3.bf16.xpose.msra.mxu0 %v1324_v36  ;;  %1349 = vmatpush3.bf16.xpose.msra.mxu1 %v1324_v36  ;;  %p1430_p4 = pnand %p1429_p3, %p1423_p0 }
  0x2e   :  { %1329 = vmatprep.subr.bf16.mxu0 %v1328_v43  ;;  %1342 = vmatprep.subr.bf16.mxu1 %v1328_v43 }
  0x2f   :  { %386 = vperm.xlu0 %1356, %v323_v45  }
  0x30   :  { %599 = vperm.xlu1 %1357, %v561_v48  }
  0x33   :  { %391 = vperm.xlu0 %1356, %v324_v49  }
  0x34   :  { %602 = vperm.xlu1 %1357, %v562_v51  }
  0x35   :  { %1331 = vmatpush3.bf16.xpose.msra.mxu0 %v1328_v43  ;;  %1350 = vmatpush3.bf16.xpose.msra.mxu1 %v1328_v43 }
  0x36   :  { %1333 = vmatprep.subr.bf16.mxu0 %v1332_v50  ;;  %1343 = vmatprep.subr.bf16.mxu1 %v1332_v50 }
  0x37   :  { %396 = vperm.xlu0 %1356, %v325_v52  }
  0x38   :  { %605 = vperm.xlu1 %1357, %v563_v53   ;;  %v489_v53 = vadd.s32 64, %v1705_v27 }
  0x3a   :  { %vm527_vm5 = vcmp.eq.s32.totalorder %v489_v53, %v1710_v31 }
  0x3b   :  { %401 = vperm.xlu0 %1356, %v326_v54  }
  0x3c   :  { %608 = vperm.xlu1 %1357, %v564_v55  }
  0x3d   :  { %1335 = vmatpush3.bf16.xpose.msra.mxu0 %v1332_v50  ;;  %1351 = vmatpush3.bf16.xpose.msra.mxu1 %v1332_v50 }
  0x3f   :  { %406 = vperm.xlu0 %1356, %v327_v56  }
  0x40   :  { %614 = vperm.xlu1 %1357, %v566_v57  }
  0x43   :  { %611 = vperm.xlu0 %1356, %v565_v62  }
  0x44   :  { %1281 = vmatmul.mubr.f32.vlgmr.msra.gmra.mrb[0].mxu0 %v85_v58  ;;  %1293 = vmatmul.mubr.f32.vlgmr.msra.gmra.mrb[0].mxu1 %v93_v59 }
  0x45   :  { %1283 = vmatprep.mubr.f32.mxu0 %v86_v60  ;;  %1295 = vmatprep.mubr.f32.mxu1 %v94_v61 }
  0x48   :  { %1284 = vmatmul.mubr.f32.gmra.mrb[2].mxu0 %v87_v63  ;;  %1296 = vmatmul.mubr.f32.gmra.mrb[2].mxu1 %v95_v0 }
  0x49   :  { %1286 = vmatprep.mubr.f32.mxu0 %v88_v1  ;;  %1298 = vmatprep.mubr.f32.mxu1 %v96_v2  ;;  %v484_v2 = vadd.s32 24, %v1705_v27 }
  0x4b   :  { %vm522_vm7 = vcmp.eq.s32.totalorder %v484_v2, %v1710_v31 }
  0x4c   :  { %1287 = vmatmul.mubr.f32.gmra.mrb[4].mxu0 %v89_v3  ;;  %1299 = vmatmul.mubr.f32.gmra.mrb[4].mxu1 %v97_v4 }
  0x4d   :  { %1289 = vmatprep.mubr.f32.mxu0 %v90_v5  ;;  %1301 = vmatprep.mubr.f32.mxu1 %v98_v6 }
  0x50   :  { %1290 = vmatmul.mubr.f32.gmra.mrb[6].mxu0 %v91_v7  ;;  %1302 = vmatmul.mubr.f32.gmra.mrb[6].mxu1 %v99_v8 }
  0x82   :  { %v1677_v9 = vpop.permute.xlu1 %341 }
  0x86   :  { %v332_v11 = vpop.permute.xlu0 %331 }
  0x87   :  { %v1679_v10 = vpop.permute.xlu1 %346  ;;  %v415_v43 = vadd.f32 %v1716_v33, %v332_v11 }
  0x88   :  { %v418_v3 = vadd.f32 %v1716_v33, %v1679_v10 }
  0x8a   :  { %v337_v13 = vpop.permute.xlu0 %336 }
  0x8b   :  { %v1681_v12 = vpop.permute.xlu1 %356  ;;  %v416_v36 = vadd.f32 %v1716_v33, %v337_v13 }
  0x8e   :  { %v1685_v15 = vpop.permute.xlu0 %351 }
  0x8f   :  { %v1683_v14 = vpop.permute.xlu1 %572 }
  0x90   :  { %vm621_vm2 = vcmp.eq.s32.totalorder %v1683_v14, %v1722_v37 }
  0x92   :  { %v1689_v17 = vpop.permute.xlu0 %569 }
  0x93   :  { %v1687_v16 = vpop.permute.xlu1 %578  ;;  %vm620_vm6 = vcmp.eq.s32.totalorder %v1689_v17, %v1722_v37 }
  0x94   :  { %vm623_vm10 = vcmp.eq.s32.totalorder %v1687_v16, %v1722_v37 }
  0x96   :  { %v1693_v19 = vpop.permute.xlu0 %575 }
  0x97   :  { %v1691_v18 = vpop.permute.xlu1 %581  ;;  %vm622_vm15 = vcmp.eq.s32.totalorder %v1693_v19, %v1722_v37 }
  0x9a   :  { %v1697_v21 = vpop.permute.xlu0 %361 }
  0x9b   :  { %v1695_v20 = vpop.permute.xlu1 %584 }
  0x9e   :  { %v1701_v23 = vpop.permute.xlu0 %366 }
  0x9f   :  { %v1699_v22 = vpop.permute.xlu1 %587 }
  0xa2   :  { %v372_v26 = vpop.permute.xlu0 %371 }
  0xa3   :  { %v1703_v25 = vpop.permute.xlu1 %590  ;;  %v423_v54 = vadd.f32 %v1716_v33, %v372_v26 }
  0xa6   :  { %v377_v29 = vpop.permute.xlu0 %376 }
  0xa7   :  { %v1707_v28 = vpop.permute.xlu1 %593  ;;  %v424_v38 = vadd.f32 %v1716_v33, %v377_v29  ;;  %v492_v29 = vadd.s32 88, %v1705_v27 }
  0xa8   :  { %vm628_vm8 = vcmp.eq.s32.totalorder %v1707_v28, %v1722_v37  ;;  %v1447_v28 = vmov -3e+38  }
  0xa9   :  { %vm530_vm9 = vcmp.eq.s32.totalorder %v492_v29, %v1710_v31  ;;  %40 = vst.msk [vmem:[#allocation3 + $0x48] sm:$0xff] %vm30_vm14, %v1447_v28  ;;  %31 = vst.msk [vmem:[#allocation3] sm:$0xff] %vm30_vm14, %v1447_v28 }
  0xaa   :  { %v1728_v46 = vpop.permute.xlu0 %381  ;;  %32 = vst.msk [vmem:[#allocation3 + $0x8] sm:$0xff] %vm30_vm14, %v1447_v28  ;;  %33 = vst.msk [vmem:[#allocation3 + $0x10] sm:$0xff] %vm30_vm14, %v1447_v28 }
  0xab   :  { %v597_v45 = vpop.permute.xlu1 %596  ;;  %v425_v17 = vadd.f32 %v1716_v33, %v1728_v46  ;;  %v486_v46 = vadd.s32 40, %v1705_v27  ;;  %34 = vst.msk [vmem:[#allocation3 + $0x18] sm:$0xff] %vm30_vm14, %v1447_v28  ;;  %35 = vst.msk [vmem:[#allocation3 + $0x20] sm:$0xff] %vm30_vm14, %v1447_v28 }
  0xac   :  { %vm629_vm4 = vcmp.eq.s32.totalorder %v597_v45, %v1722_v37  ;;  %36 = vst.msk [vmem:[#allocation3 + $0x28] sm:$0xff] %vm30_vm14, %v1447_v28  ;;  %37 = vst.msk [vmem:[#allocation3 + $0x30] sm:$0xff] %vm30_vm14, %v1447_v28 }
  0xad   :  { %38 = vst.msk [vmem:[#allocation3 + $0x38] sm:$0xff] %vm30_vm14, %v1447_v28  ;;  %39 = vst.msk [vmem:[#allocation3 + $0x40] sm:$0xff] %vm30_vm14, %v1447_v28 }
  0xae   :  { %v387_v8 = vpop.permute.xlu0 %386  ;;  %41 = vst.msk [vmem:[#allocation3 + $0x50] sm:$0xff] %vm30_vm14, %v1447_v28  ;;  %42 = vst.msk [vmem:[#allocation3 + $0x58] sm:$0xff] %vm30_vm14, %v1447_v28 }
  0xaf   :  { %v426_v14 = vadd.f32 %v1716_v33, %v387_v8  ;;  %43 = vst.msk [vmem:[#allocation3 + $0x60] sm:$0xff] %vm30_vm14, %v1447_v28  ;;  %44 = vst.msk [vmem:[#allocation3 + $0x68] sm:$0xff] %vm30_vm14, %v1447_v28 }
  0xb0   :  { %45 = vst.msk [vmem:[#allocation3 + $0x70] sm:$0xff] %vm30_vm14, %v1447_v28  ;;  %46 = vst.msk [vmem:[#allocation3 + $0x78] sm:$0xff] %vm30_vm14, %v1447_v28 }
 0x117   :  { %v1282_v34 = vpop.f32.mrb[0].mxu0  ;;  %v1294_v35 = vpop.f32.mrb[0].mxu1 }
 0x118   :  { %v448_v39 = vmul.f32 2.0, %v1282_v34  ;;  %v456_v40 = vmul.f32 2.0, %v1294_v35  ;;  %v198_v41 = vpop.f32.mrb[1].mxu0  ;;  %v238_v42 = vpop.f32.mrb[1].mxu1 }
 0x119   :  { %v447_v44 = vmul.f32 2.0, %v198_v41  ;;  %v455_v49 = vmul.f32 2.0, %v238_v42  ;;  %v1777_v34 = vpop.permute.xlu1 %599  ;;  %v483_v41 = vadd.s32 16, %v1705_v27  ;;  %v417_v42 = vadd.f32 %v1716_v33, %v1677_v9 }
 0x11a   :  { %v464_v47 = vsub.f32 %v416_v36, %v448_v39  ;;  %v472_v48 = vsub.f32 %v424_v38, %v456_v40  ;;  %v491_v9 = vadd.s32 80, %v1705_v27 }
 0x11b   :  { %v463_v50 = vsub.f32 %v415_v43, %v447_v44  ;;  %v1285_v51 = vpop.f32.mrb[2].mxu0  ;;  %v1297_v52 = vpop.f32.mrb[2].mxu1  ;;  %v471_v61 = vsub.f32 %v423_v54, %v455_v49  ;;  %vm521_vm11 = vcmp.eq.s32.totalorder %v483_v41, %v1710_v31 }
 0x11c   :  { %v208_v55 = vpop.f32.mrb[3].mxu0  ;;  %v248_v56 = vpop.f32.mrb[3].mxu1  ;;  %v544_v57 = vsel %vm528_vm0, 0.0, %v472_v48  ;;  %v536_v58 = vsel %vm520_vm1, 0.0, %v464_v47  ;;  %v450_v62 = vmul.f32 2.0, %v1285_v51  ;;  %v458_v13 = vmul.f32 2.0, %v1297_v52 }
 0x11d   :  { %v645_v59 = vsel %vm629_vm4, %v544_v57, -3e+38  ;;  %v637_v60 = vsel %vm621_vm2, %v536_v58, -3e+38  ;;  %v535_v63 = vsel %vm519_vm3, 0.0, %v463_v50  ;;  %v543_v10 = vsel %vm527_vm5, 0.0, %v471_v61  ;;  %v1798_v49 = vpop.permute.xlu1 %602 }
 0x11e   :  { %702 = vmax.xlane.f32.xlu1 %v645_v59  ;;  %686 = vmax.xlane.f32.xlu0 %v637_v60  ;;  %v653_v6 = vsel %vm621_vm2, 3e+38, %v536_v58  ;;  %v652_v7 = vsel %vm620_vm6, 3e+38, %v535_v63  ;;  %v466_v11 = vsub.f32 %v418_v3, %v450_v62  ;;  %v661_v35 = vsel %vm629_vm4, 3e+38, %v544_v57  ;;  %v392_v62 = vpop.permute.xlu0 %391 }
 0x11f   :  { %v1288_v0 = vpop.f32.mrb[4].mxu0  ;;  %v1746_v1 = vpop.f32.mrb[4].mxu1  ;;  %v644_v36 = vsel %vm628_vm8, %v543_v10, -3e+38  ;;  %v474_v38 = vsub.f32 %v426_v14, %v458_v13  ;;  %v449_v39 = vmul.f32 2.0, %v208_v55  ;;  %v457_v47 = vmul.f32 2.0, %v248_v56 }
 0x120   :  { %v1754_v4 = vpop.f32.mrb[5].mxu0  ;;  %v1756_v5 = vpop.f32.mrb[5].mxu1  ;;  %v538_v40 = vsel %vm522_vm7, 0.0, %v466_v11  ;;  %v636_v43 = vsel %vm620_vm6, %v535_v63, -3e+38  ;;  %vm631_vm12 = vcmp.eq.s32.totalorder %v1798_v49, %v1722_v37  ;;  %v452_v53 = vmul.f32 2.0, %v1288_v0 }
 0x121   :  { %v639_v44 = vsel %vm623_vm10, %v538_v40, -3e+38  ;;  %v465_v45 = vsub.f32 %v417_v42, %v449_v39  ;;  %v1796_v48 = vsel %vm530_vm9, 0.0, %v474_v38  ;;  %v660_v50 = vsel %vm628_vm8, 3e+38, %v543_v10 }
 0x122   :  { %767 = vmin.xlane.f32.xlu0 %v653_v6  ;;  %765 = vmin.xlane.f32.xlu1 %v652_v7  ;;  %v647_v51 = vsel %vm631_vm12, %v1796_v48, -3e+38  ;;  %v473_v52 = vsub.f32 %v425_v17, %v457_v47  ;;  %vm529_vm13 = vcmp.eq.s32.totalorder %v491_v9, %v1710_v31  ;;  %v420_v55 = vadd.f32 %v1716_v33, %v1681_v12  ;;  %v397_v10 = vpop.permute.xlu0 %396 }
 0x123   :  { %v1764_v24 = vpop.f32.mrb[6].mxu0  ;;  %v1766_v26 = vpop.f32.mrb[6].mxu1  ;;  %v537_v54 = vsel %vm521_vm11, 0.0, %v465_v45  ;;  %v655_v12 = vsel %vm623_vm10, 3e+38, %v538_v40  ;;  %v451_v58 = vmul.f32 2.0, %v1754_v4  ;;  %vm524_vm0 = vcmp.eq.s32.totalorder %v486_v46, %v1710_v31 }
 0x124   :  { %v1773_v30 = vpop.f32.mrb[7].mxu0  ;;  %v1775_v32 = vpop.f32.mrb[7].mxu1  ;;  %v638_v56 = vsel %vm622_vm15, %v537_v54, -3e+38  ;;  %v1448_v57 = vmov 3e+38   ;;  %v468_v16 = vsub.f32 %v420_v55, %v452_v53  ;;  %v419_v61 = vadd.f32 %v1716_v33, %v1685_v15 }
 0x125   :  { %48 = vst.msk [vmem:[#allocation4 + $0x8] sm:$0xff] %vm30_vm14, %v1448_v57  ;;  %47 = vst.msk [vmem:[#allocation4] sm:$0xff] %vm30_vm14, %v1448_v57  ;;  %v545_v59 = vsel %vm529_vm13, 0.0, %v473_v52  ;;  %v485_v60 = vadd.s32 32, %v1705_v27  ;;  %vm630_vm1 = vcmp.eq.s32.totalorder %v1777_v34, %v1722_v37  ;;  %v654_v63 = vsel %vm622_vm15, 3e+38, %v537_v54 }
 0x126   :  { %783 = vmin.xlane.f32.xlu0 %v661_v35  ;;  %700 = vmax.xlane.f32.xlu1 %v644_v36  ;;  %49 = vst.msk [vmem:[#allocation4 + $0x10] sm:$0xff] %vm30_vm14, %v1448_v57  ;;  %50 = vst.msk [vmem:[#allocation4 + $0x18] sm:$0xff] %vm30_vm14, %v1448_v57  ;;  %v646_v0 = vsel %vm630_vm1, %v545_v59, -3e+38  ;;  %v467_v2 = vsub.f32 %v419_v61, %v451_v58  ;;  %v454_v3 = vmul.f32 2.0, %v1764_v24  ;;  %v540_v4 = vsel %vm524_vm0, 0.0, %v468_v16  ;;  %v606_v36 = vpop.permute.xlu1 %605  ;;  %v402_v38 = vpop.permute.xlu0 %401 }
 0x127   :  { %51 = vst.msk [vmem:[#allocation4 + $0x20] sm:$0xff] %vm30_vm14, %v1448_v57  ;;  %52 = vst.msk [vmem:[#allocation4 + $0x28] sm:$0xff] %vm30_vm14, %v1448_v57  ;;  %vm523_vm2 = vcmp.eq.s32.totalorder %v485_v60, %v1710_v31  ;;  %v488_v6 = vadd.s32 56, %v1705_v27  ;;  %vm625_vm3 = vcmp.eq.s32.totalorder %v1695_v20, %v1722_v37  ;;  %v422_v15 = vadd.f32 %v1716_v33, %v1701_v23  ;;  %v677_v60 = vld [vmem:[#allocation3 + $0x48] sm:$0xff] }
 0x128   :  { %53 = vst.msk [vmem:[#allocation4 + $0x30] sm:$0xff] %vm30_vm14, %v1448_v57  ;;  %54 = vst.msk [vmem:[#allocation4 + $0x38] sm:$0xff] %vm30_vm14, %v1448_v57  ;;  %v662_v7 = vsel %vm630_vm1, 3e+38, %v545_v59  ;;  %v641_v19 = vsel %vm625_vm3, %v540_v4, -3e+38  ;;  %vm624_vm5 = vcmp.eq.s32.totalorder %v1691_v18, %v1722_v37  ;;  %v421_v20 = vadd.f32 %v1716_v33, %v1697_v21 }
 0x129   :  { %55 = vst.msk [vmem:[#allocation4 + $0x40] sm:$0xff] %vm30_vm14, %v1448_v57  ;;  %56 = vst.msk [vmem:[#allocation4 + $0x48] sm:$0xff] %vm30_vm14, %v1448_v57  ;;  %v470_v8 = vsub.f32 %v422_v15, %v454_v3  ;;  %v453_v11 = vmul.f32 2.0, %v1773_v30  ;;  %v539_v13 = vsel %vm523_vm2, 0.0, %v467_v2  ;;  %vm526_vm4 = vcmp.eq.s32.totalorder %v488_v6, %v1710_v31  ;;  %v669_v61 = vld [vmem:[#allocation3 + $0x8] sm:$0xff] }
 0x12a   :  { %684 = vmax.xlane.f32.xlu0 %v636_v43  ;;  %690 = vmax.xlane.f32.xlu1 %v639_v44  ;;  %57 = vst.msk [vmem:[#allocation4 + $0x50] sm:$0xff] %vm30_vm14, %v1448_v57  ;;  %58 = vst.msk [vmem:[#allocation4 + $0x58] sm:$0xff] %vm30_vm14, %v1448_v57  ;;  %v487_v24 = vadd.s32 48, %v1705_v27  ;;  %v657_v23 = vsel %vm625_vm3, 3e+38, %v540_v4  ;;  %v459_v14 = vmul.f32 2.0, %v1756_v5  ;;  %vm627_vm7 = vcmp.eq.s32.totalorder %v1703_v25, %v1722_v37  ;;  %v609_v9 = vpop.permute.xlu1 %608  ;;  %v407_v17 = vpop.permute.xlu0 %406 }
 0x12b   :  { %59 = vst.msk [vmem:[#allocation4 + $0x60] sm:$0xff] %vm30_vm14, %v1448_v57  ;;  %60 = vst.msk [vmem:[#allocation4 + $0x68] sm:$0xff] %vm30_vm14, %v1448_v57  ;;  %v640_v29 = vsel %vm624_vm5, %v539_v13, -3e+38  ;;  %v469_v34 = vsub.f32 %v421_v20, %v453_v11  ;;  %v542_v30 = vsel %vm526_vm4, 0.0, %v470_v8  ;;  %v493_v35 = vadd.s32 96, %v1705_v27 }
 0x12c   :  { %61 = vst.msk [vmem:[#allocation4 + $0x70] sm:$0xff] %vm30_vm14, %v1448_v57  ;;  %62 = vst.msk [vmem:[#allocation4 + $0x78] sm:$0xff] %vm30_vm14, %v1448_v57  ;;  %vm525_vm6 = vcmp.eq.s32.totalorder %v487_v24, %v1710_v31  ;;  %v427_v18 = vadd.f32 %v1716_v33, %v392_v62  ;;  %v656_v21 = vsel %vm624_vm5, 3e+38, %v539_v13  ;;  %v643_v39 = vsel %vm627_vm7, %v542_v30, -3e+38 }
 0x12d   :  { %v460_v40 = vmul.f32 2.0, %v1746_v1  ;;  %v541_v41 = vsel %vm525_vm6, 0.0, %v469_v34  ;;  %vm531_vm8 = vcmp.eq.s32.totalorder %v493_v35, %v1710_v31  ;;  %v494_v42 = vadd.s32 104, %v1705_v27  ;;  %v750_v3 = vld [vmem:[#allocation4 + $0x8] sm:$0xff]  ;;  %v749_v4 = vld [vmem:[#allocation4] sm:$0xff] }
 0x12e   :  { %781 = vmin.xlane.f32.xlu0 %v660_v50  ;;  %706 = vmax.xlane.f32.xlu1 %v647_v51  ;;  %v475_v5 = vsub.f32 %v427_v18, %v459_v14  ;;  %vm626_vm9 = vcmp.eq.s32.totalorder %v1699_v22, %v1722_v37  ;;  %v428_v25 = vadd.f32 %v1716_v33, %v397_v10  ;;  %v659_v43 = vsel %vm627_vm7, 3e+38, %v542_v30  ;;  %v615_v28 = vpop.permute.xlu1 %614  ;;  %v676_v8 = vld [vmem:[#allocation3 + $0x40] sm:$0xff] }
 0x12f   :  { %v642_v44 = vsel %vm626_vm9, %v541_v41, -3e+38  ;;  %v462_v47 = vmul.f32 2.0, %v1766_v26  ;;  %vm532_vm10 = vcmp.eq.s32.totalorder %v494_v42, %v1710_v31  ;;  %v496_v50 = vadd.s32 120, %v1705_v27  ;;  %v668_v20 = vld [vmem:[#allocation3] sm:$0xff] }
 0x130   :  { %v476_v45 = vsub.f32 %v428_v25, %v460_v40  ;;  %v547_v1 = vsel %vm531_vm8, 0.0, %v475_v5  ;;  %vm632_vm11 = vcmp.eq.s32.totalorder %v606_v36, %v1722_v37  ;;  %v430_v22 = vadd.f32 %v1716_v33, %v407_v17  ;;  %v757_v36 = vld [vmem:[#allocation4 + $0x40] sm:$0xff] }
 0x131   :  { %v658_v51 = vsel %vm626_vm9, 3e+38, %v541_v41  ;;  %v648_v52 = vsel %vm632_vm11, %v547_v1, -3e+38  ;;  %v461_v26 = vmul.f32 2.0, %v1775_v32  ;;  %vm534_vm13 = vcmp.eq.s32.totalorder %v496_v50, %v1710_v31 }
 0x132   :  { %771 = vmin.xlane.f32.xlu0 %v655_v12  ;;  %688 = vmax.xlane.f32.xlu1 %v638_v56  ;;  %v478_v53 = vsub.f32 %v430_v22, %v462_v47  ;;  %v548_v54 = vsel %vm532_vm10, 0.0, %v476_v45  ;;  %v495_v46 = vadd.s32 112, %v1705_v27  ;;  %vm633_vm15 = vcmp.eq.s32.totalorder %v609_v9, %v1722_v37  ;;  %v612_v27 = vpop.permute.xlu0 %611  ;;  %v752_v45 = vld [vmem:[#allocation4 + $0x18] sm:$0xff]  ;;  %v670_v47 = vld [vmem:[#allocation3 + $0x10] sm:$0xff] }
 0x133   :  { %v429_v55 = vadd.f32 %v1716_v33, %v402_v38  ;;  %v663_v12 = vsel %vm631_vm12, 3e+38, %v1796_v48  ;;  %v649_v32 = vsel %vm633_vm15, %v548_v54, -3e+38  ;;  %vm635_vm1 = vcmp.eq.s32.totalorder %v615_v28, %v1722_v37  ;;  %v679_v38 = vld [vmem:[#allocation3 + $0x58] sm:$0xff] }
 0x134   :  { %v550_v57 = vsel %vm534_vm13, 0.0, %v478_v53  ;;  %vm533_vm0 = vcmp.eq.s32.totalorder %v495_v46, %v1710_v31  ;;  %v664_v33 = vsel %vm632_vm11, 3e+38, %v547_v1  ;;  %vm634_vm12 = vcmp.eq.s32.totalorder %v612_v27, %v1722_v37  ;;  %v678_v53 = vld [vmem:[#allocation3 + $0x50] sm:$0xff] }
 0x135   :  { %v477_v56 = vsub.f32 %v429_v55, %v461_v26  ;;  %v651_v16 = vsel %vm635_vm1, %v550_v57, -3e+38  ;;  %v665_v48 = vsel %vm633_vm15, 3e+38, %v548_v54  ;;  %v667_v31 = vsel %vm635_vm1, 3e+38, %v550_v57 }
 0x136   :  { %769 = vmin.xlane.f32.xlu0 %v654_v63  ;;  %704 = vmax.xlane.f32.xlu1 %v646_v0 }
 0x137   :  { %v549_v49 = vsel %vm533_vm0, 0.0, %v477_v56 }
 0x138   :  { %v650_v58 = vsel %vm634_vm12, %v549_v49, -3e+38  ;;  %v666_v59 = vsel %vm634_vm12, 3e+38, %v549_v49 }
 0x13a   :  { %785 = vmin.xlane.f32.xlu0 %v662_v7  ;;  %694 = vmax.xlane.f32.xlu1 %v641_v19  ;;  %v758_v19 = vld [vmem:[#allocation4 + $0x48] sm:$0xff] }
 0x13e   :  { %775 = vmin.xlane.f32.xlu0 %v657_v23  ;;  %692 = vmax.xlane.f32.xlu1 %v640_v29  ;;  %v671_v23 = vld [vmem:[#allocation3 + $0x18] sm:$0xff] }
 0x142   :  { %773 = vmin.xlane.f32.xlu0 %v656_v21  ;;  %698 = vmax.xlane.f32.xlu1 %v643_v39 }
 0x146   :  { %779 = vmin.xlane.f32.xlu0 %v659_v43  ;;  %696 = vmax.xlane.f32.xlu1 %v642_v44 }
 0x14a   :  { %777 = vmin.xlane.f32.xlu0 %v658_v51  ;;  %708 = vmax.xlane.f32.xlu1 %v648_v52  ;;  %v751_v52 = vld [vmem:[#allocation4 + $0x10] sm:$0xff] }
 0x14e   :  { %787 = vmin.xlane.f32.xlu0 %v663_v12  ;;  %710 = vmax.xlane.f32.xlu1 %v649_v32 }
 0x152   :  { %789 = vmin.xlane.f32.xlu0 %v664_v33  ;;  %714 = vmax.xlane.f32.xlu1 %v651_v16  ;;  %v759_v33 = vld [vmem:[#allocation4 + $0x50] sm:$0xff]  ;;  %v673_v16 = vld [vmem:[#allocation3 + $0x28] sm:$0xff] }
 0x156   :  { %791 = vmin.xlane.f32.xlu0 %v665_v48  ;;  %712 = vmax.xlane.f32.xlu1 %v650_v58 }
 0x15a   :  { %793 = vmin.xlane.f32.xlu0 %v666_v59 }
 0x15e   :  { %795 = vmin.xlane.f32.xlu0 %v667_v31 }
 0x1ab   :  { %v703_v62 = vpop.xlane.xlu1 %702  ;;  %v687_v63 = vpop.xlane.xlu0 %686 }
 0x1ac   :  { %v725_v0 = vmax.f32 %v677_v60, %v703_v62  ;;  %v717_v2 = vmax.f32 %v669_v61, %v687_v63 }
 0x1ae   :  { %742 = vst.msk [vmem:[#allocation3 + $0x48] sm:$0xff] %vm30_vm14, %v725_v0  ;;  %734 = vst.msk [vmem:[#allocation3 + $0x8] sm:$0xff] %vm30_vm14, %v717_v2  ;;  %v754_v2 = vld [vmem:[#allocation4 + $0x28] sm:$0xff] }
 0x1af   :  { %v768_v37 = vpop.xlane.xlu0 %767  ;;  %v766_v6 = vpop.xlane.xlu1 %765 }
 0x1b0   :  { %v798_v15 = vmin.f32 %v750_v3, %v768_v37  ;;  %v797_v7 = vmin.f32 %v749_v4, %v766_v6  ;;  %v672_v37 = vld [vmem:[#allocation3 + $0x20] sm:$0xff] }
 0x1b2   :  { %814 = vst.msk [vmem:[#allocation4 + $0x8] sm:$0xff] %vm30_vm14, %v798_v15  ;;  %813 = vst.msk [vmem:[#allocation4] sm:$0xff] %vm30_vm14, %v797_v7 }
 0x1b3   :  { %v784_v11 = vpop.xlane.xlu0 %783  ;;  %v701_v13 = vpop.xlane.xlu1 %700 }
 0x1b4   :  { %v806_v10 = vmin.f32 %v758_v19, %v784_v11  ;;  %v724_v24 = vmax.f32 %v676_v8, %v701_v13 }
 0x1b5   :  { %v832_v29 = vld [vmem:[#allocation3 + $0x8] sm:$0xff] }
 0x1b6   :  { %822 = vst.msk [vmem:[#allocation4 + $0x48] sm:$0xff] %vm30_vm14, %v806_v10  ;;  %741 = vst.msk [vmem:[#allocation3 + $0x40] sm:$0xff] %vm30_vm14, %v724_v24  ;;  %v1926_v30 = vmax.f32 %v832_v29, 1e-12  ;;  %v840_v25 = vld [vmem:[#allocation3 + $0x48] sm:$0xff] }
 0x1b7   :  { %v685_v14 = vpop.xlane.xlu0 %684  ;;  %v691_v34 = vpop.xlane.xlu1 %690  ;;  %v1939_v9 = vmax.f32 %v840_v25, 1e-12 }
 0x1b8   :  { %v716_v35 = vmax.f32 %v668_v20, %v685_v14  ;;  %v719_v18 = vmax.f32 %v671_v23, %v691_v34  ;;  %1358 = vrsqrt.f32 %v1926_v30  ;;  %vm872_vm2 = vcmp.eq.f32.partialorder %v1926_v30, inf }
 0x1b9   :  { %v975_v21 = vld [vmem:[#allocation4] sm:$0xff]  ;;  %v976_v39 = vld [vmem:[#allocation4 + $0x8] sm:$0xff]  ;;  %vm874_vm3 = vcmp.eq.f32.partialorder %v1926_v30, 0.0  ;;  %v875_v31 = vand.u32 2147483648, %v1926_v30  ;;  %v931_v60 = vand.u32 2147483648, %v1939_v9  ;;  %vm928_vm8 = vcmp.eq.f32.partialorder %v1939_v9, inf }
 0x1ba   :  { %733 = vst.msk [vmem:[#allocation3] sm:$0xff] %vm30_vm14, %v716_v35  ;;  %736 = vst.msk [vmem:[#allocation3 + $0x18] sm:$0xff] %vm30_vm14, %v719_v18  ;;  %v1930_v40 = vmax.f32 %v975_v21, 1e-12  ;;  %v1932_v5 = vmax.f32 %v976_v39, 1e-12 }
 0x1bb   :  { %v782_v41 = vpop.xlane.xlu0 %781  ;;  %v707_v42 = vpop.xlane.xlu1 %706  ;;  %vm930_vm13 = vcmp.eq.f32.partialorder %v1939_v9, 0.0 }
 0x1bc   :  { %v805_v43 = vmin.f32 %v757_v36, %v782_v41  ;;  %v727_v44 = vmax.f32 %v679_v38, %v707_v42  ;;  %1360 = vrsqrt.f32 %v1932_v5  ;;  %vm1009_vm4 = vcmp.eq.f32.partialorder %v1930_v40, inf  ;;  %v753_v36 = vld [vmem:[#allocation4 + $0x20] sm:$0xff]  ;;  %v675_v38 = vld [vmem:[#allocation3 + $0x38] sm:$0xff] }
 0x1bd   :  { %1362 = vrsqrt.f32 %v1930_v40  ;;  %v839_v1 = vld [vmem:[#allocation3 + $0x40] sm:$0xff]  ;;  %v984_v57 = vld [vmem:[#allocation4 + $0x48] sm:$0xff]  ;;  %vm1011_vm5 = vcmp.eq.f32.partialorder %v1930_v40, 0.0  ;;  %v1012_v6 = vand.u32 2147483648, %v1930_v40  ;;  %vm1016_vm6 = vcmp.eq.f32.partialorder %v1932_v5, inf }
 0x1be   :  { %821 = vst.msk [vmem:[#allocation4 + $0x40] sm:$0xff] %vm30_vm14, %v805_v43  ;;  %744 = vst.msk [vmem:[#allocation3 + $0x58] sm:$0xff] %vm30_vm14, %v727_v44  ;;  %v1941_v54 = vmax.f32 %v839_v1, 1e-12  ;;  %1364 = vrsqrt.f32 %v1939_v9  ;;  %v1959_v61 = vmax.f32 %v984_v57, 1e-12 }
 0x1bf   :  { %v772_v17 = vpop.xlane.xlu0 %771  ;;  %v689_v50 = vpop.xlane.xlu1 %688  ;;  %vm1018_vm7 = vcmp.eq.f32.partialorder %v1932_v5, 0.0  ;;  %v1019_v23 = vand.u32 2147483648, %v1932_v5 }
 0x1c0   :  { %v800_v22 = vmin.f32 %v752_v45, %v772_v17  ;;  %v718_v51 = vmax.f32 %v670_v47, %v689_v50  ;;  %v924_v29 = vand.u32 2147483648, %v1941_v54  ;;  %v1075_v42 = vand.u32 2147483648, %v1959_v61 }
 0x1c1   :  { %v831_v26 = vld [vmem:[#allocation3] sm:$0xff]  ;;  %v834_v55 = vld [vmem:[#allocation3 + $0x18] sm:$0xff]  ;;  %vm921_vm11 = vcmp.eq.f32.partialorder %v1941_v54, inf  ;;  %vm923_vm0 = vcmp.eq.f32.partialorder %v1941_v54, 0.0 }
 0x1c2   :  { %816 = vst.msk [vmem:[#allocation4 + $0x18] sm:$0xff] %vm30_vm14, %v800_v22  ;;  %735 = vst.msk [vmem:[#allocation3 + $0x10] sm:$0xff] %vm30_vm14, %v718_v51  ;;  %v1945_v46 = vmax.f32 %v831_v26, 1e-12  ;;  %v1359_v27 = vpop.eup %1358  ;;  %v1949_v49 = vmax.f32 %v834_v55, 1e-12 }
 0x1c3   :  { %v770_v28 = vpop.xlane.xlu0 %769  ;;  %v705_v12 = vpop.xlane.xlu1 %704  ;;  %v871_v3 = vmul.f32 %v1359_v27, %v1926_v30  ;;  %v756_v55 = vld [vmem:[#allocation4 + $0x38] sm:$0xff] }
 0x1c4   :  { %v799_v32 = vmin.f32 %v751_v52, %v770_v28  ;;  %v726_v56 = vmax.f32 %v678_v53, %v705_v12  ;;  %1366 = vrsqrt.f32 %v1945_v46  ;;  %vm865_vm9 = vcmp.eq.f32.partialorder %v1945_v46, inf  ;;  %v674_v28 = vld [vmem:[#allocation3 + $0x30] sm:$0xff] }
 0x1c5   :  { %1368 = vrsqrt.f32 %v1941_v54  ;;  %v983_v13 = vld [vmem:[#allocation4 + $0x40] sm:$0xff]  ;;  %v873_v18 = vsel %vm872_vm2, %v1926_v30, %v871_v3  ;;  %vm867_vm10 = vcmp.eq.f32.partialorder %v1945_v46, 0.0  ;;  %v868_v43 = vand.u32 2147483648, %v1945_v46  ;;  %v842_v44 = vld [vmem:[#allocation3 + $0x58] sm:$0xff] }
 0x1c6   :  { %815 = vst.msk [vmem:[#allocation4 + $0x10] sm:$0xff] %vm30_vm14, %v799_v32  ;;  %743 = vst.msk [vmem:[#allocation3 + $0x50] sm:$0xff] %vm30_vm14, %v726_v56  ;;  %v1361_v48 = vpop.eup %1360  ;;  %1370 = vrsqrt.f32 %v1949_v49  ;;  %v1987_v41 = vmax.f32 %v983_v13, 1e-12  ;;  %v876_v22 = vsel %vm874_vm3, %v875_v31, %v873_v18  ;;  %vm886_vm15 = vcmp.eq.f32.partialorder %v1949_v49, inf }
 0x1c7   :  { %v786_v58 = vpop.xlane.xlu0 %785  ;;  %v695_v59 = vpop.xlane.xlu1 %694  ;;  %v1015_v4 = vmul.f32 %v1361_v48, %v1932_v5  ;;  %1372 = vrsqrt.f32 %v1959_v61  ;;  %v889_v32 = vand.u32 2147483648, %v1949_v49  ;;  %v2013_v30 = vmax.f32 %v842_v44, 1e-12 }
 0x1c8   :  { %v1363_v62 = vpop.eup %1362  ;;  %v807_v63 = vmin.f32 %v759_v33, %v786_v58  ;;  %v721_v0 = vmax.f32 %v673_v16, %v695_v59  ;;  %vm888_vm12 = vcmp.eq.f32.partialorder %v1949_v49, 0.0 }
 0x1c9   :  { %v833_v15 = vld [vmem:[#allocation3 + $0x10] sm:$0xff]  ;;  %v978_v7 = vld [vmem:[#allocation4 + $0x18] sm:$0xff]  ;;  %v1017_v19 = vsel %vm1016_vm6, %v1932_v5, %v1015_v4  ;;  %v1008_v20 = vmul.f32 %v1363_v62, %v1930_v40  ;;  %v1365_v14 = vpop.eup %1364 }
 0x1ca   :  { %823 = vst.msk [vmem:[#allocation4 + $0x50] sm:$0xff] %vm30_vm14, %v807_v63  ;;  %738 = vst.msk [vmem:[#allocation3 + $0x28] sm:$0xff] %vm30_vm14, %v721_v0  ;;  %v1971_v8 = vmax.f32 %v833_v15, 1e-12  ;;  %v1973_v11 = vmax.f32 %v978_v7, 1e-12  ;;  %v1020_v21 = vsel %vm1018_vm7, %v1019_v23, %v1017_v19  ;;  %v927_v51 = vmul.f32 %v1365_v14, %v1939_v9 }
 0x1cb   :  { %v776_v10 = vpop.xlane.xlu0 %775  ;;  %v693_v24 = vpop.xlane.xlu1 %692  ;;  %v1010_v50 = vsel %vm1009_vm4, %v1930_v40, %v1008_v20  ;;  %v1120_v26 = vsub.f32 %v876_v22, %v1020_v21  ;;  %v755_v0 = vld [vmem:[#allocation4 + $0x30] sm:$0xff] }
 0x1cc   :  { %v802_v34 = vmin.f32 %v754_v2, %v776_v10  ;;  %v720_v35 = vmax.f32 %v672_v37, %v693_v24  ;;  %1374 = vrsqrt.f32 %v1971_v8  ;;  %v1013_v27 = vsel %vm1011_vm5, %v1012_v6, %v1010_v50  ;;  %v680_v2 = vld [vmem:[#allocation3 + $0x60] sm:$0xff] }
 0x1cd   :  { %v977_v39 = vld [vmem:[#allocation4 + $0x10] sm:$0xff]  ;;  %1376 = vrsqrt.f32 %v1973_v11  ;;  %vm879_vm1 = vcmp.eq.f32.partialorder %v1971_v8, inf  ;;  %v929_v62 = vsel %vm928_vm8, %v1939_v9, %v927_v51  ;;  %v1136_v3 = vadd.f32 0.3, %v1120_v26 }
 0x1ce   :  { %v1367_v25 = vpop.eup %1366  ;;  %818 = vst.msk [vmem:[#allocation4 + $0x28] sm:$0xff] %vm30_vm14, %v802_v34  ;;  %737 = vst.msk [vmem:[#allocation3 + $0x20] sm:$0xff] %vm30_vm14, %v720_v35  ;;  %v1995_v5 = vmax.f32 %v977_v39, 1e-12  ;;  %v882_v4 = vand.u32 2147483648, %v1971_v8  ;;  %vm881_vm2 = vcmp.eq.f32.partialorder %v1971_v8, 0.0 }
 0x1cf   :  { %v1369_v45 = vpop.eup %1368  ;;  %v774_v47 = vpop.xlane.xlu0 %773  ;;  %v864_v17 = vmul.f32 %v1367_v25, %v1945_v46  ;;  %vm1030_vm3 = vcmp.eq.f32.partialorder %v1973_v11, inf  ;;  %vm1032_vm4 = vcmp.eq.f32.partialorder %v1973_v11, 0.0  ;;  %v1033_v10 = vand.u32 2147483648, %v1973_v11  ;;  %v760_v25 = vld [vmem:[#allocation4 + $0x58] sm:$0xff]  ;;  %v841_v22 = vld [vmem:[#allocation3 + $0x50] sm:$0xff] }
 0x1d0   :  { %v699_v1 = vpop.xlane.xlu1 %698  ;;  %v801_v52 = vmin.f32 %v753_v36, %v774_v47  ;;  %1378 = vrsqrt.f32 %v1995_v5  ;;  %v920_v16 = vmul.f32 %v1369_v45, %v1941_v54  ;;  %v1371_v48 = vpop.eup %1370  ;;  %vm1072_vm5 = vcmp.eq.f32.partialorder %v1959_v61, inf }
 0x1d1   :  { %v723_v53 = vmax.f32 %v675_v38, %v699_v1  ;;  %v866_v12 = vsel %vm865_vm9, %v1945_v46, %v864_v17  ;;  %v836_v56 = vld [vmem:[#allocation3 + $0x28] sm:$0xff]  ;;  %1380 = vrsqrt.f32 %v1987_v41  ;;  %v1068_v46 = vand.u32 2147483648, %v1987_v41  ;;  %v1373_v37 = vpop.eup %1372  ;;  %v985_v51 = vld [vmem:[#allocation4 + $0x50] sm:$0xff] }
 0x1d2   :  { %817 = vst.msk [vmem:[#allocation4 + $0x20] sm:$0xff] %vm30_vm14, %v801_v52  ;;  %v869_v57 = vsel %vm867_vm10, %v868_v43, %v866_v12  ;;  %v2023_v33 = vmax.f32 %v836_v56, 1e-12  ;;  %v885_v13 = vmul.f32 %v1371_v48, %v1949_v49  ;;  %v922_v36 = vsel %vm921_vm11, %v1941_v54, %v920_v16  ;;  %v681_v43 = vld [vmem:[#allocation3 + $0x68] sm:$0xff]  ;;  %v761_v16 = vld [vmem:[#allocation4 + $0x60] sm:$0xff]  ;;  %v683_v48 = vld [vmem:[#allocation3 + $0x78] sm:$0xff] }
 0x1d3   :  { %740 = vst.msk [vmem:[#allocation3 + $0x38] sm:$0xff] %vm30_vm14, %v723_v53  ;;  %v780_v58 = vpop.xlane.xlu0 %779  ;;  %v1119_v31 = vsub.f32 %v869_v57, %v1013_v27  ;;  %v2054_v38 = vsel %vm930_vm13, %v931_v60, %v929_v62  ;;  %v1152_v45 = vmax.f32 %v1136_v3, 0.0  ;;  %vm1023_vm6 = vcmp.eq.f32.partialorder %v1995_v5, inf }
 0x1d4   :  { %v697_v59 = vpop.xlane.xlu1 %696  ;;  %v804_v40 = vmin.f32 %v756_v55, %v780_v58  ;;  %1382 = vrsqrt.f32 %v2023_v33  ;;  %vm1025_vm7 = vcmp.eq.f32.partialorder %v1995_v5, 0.0  ;;  %v1026_v9 = vand.u32 2147483648, %v1995_v5 }
 0x1d5   :  { %v722_v63 = vmax.f32 %v674_v28, %v697_v59  ;;  %v1135_v6 = vadd.f32 0.3, %v1119_v31  ;;  %v835_v15 = vld [vmem:[#allocation3 + $0x20] sm:$0xff]  ;;  %v980_v7 = vld [vmem:[#allocation4 + $0x28] sm:$0xff]  ;;  %v887_v1 = vsel %vm886_vm15, %v1949_v49, %v885_v13  ;;  %v2081_v12 = vsel %vm923_vm0, %v924_v29, %v922_v36  ;;  %v682_v13 = vld [vmem:[#allocation3 + $0x70] sm:$0xff] }
 0x1d6   :  { %v1375_v19 = vpop.eup %1374  ;;  %820 = vst.msk [vmem:[#allocation4 + $0x38] sm:$0xff] %vm30_vm14, %v804_v40  ;;  %v2042_v24 = vmax.f32 %v835_v15, 1e-12  ;;  %v2044_v20 = vmax.f32 %v980_v7, 1e-12  ;;  %v1071_v56 = vmul.f32 %v1373_v37, %v1959_v61  ;;  %v890_v54 = vsel %vm888_vm12, %v889_v32, %v887_v1  ;;  %v763_v1 = vld [vmem:[#allocation4 + $0x70] sm:$0xff] }
 0x1d7   :  { %739 = vst.msk [vmem:[#allocation3 + $0x30] sm:$0xff] %vm30_vm14, %v722_v63  ;;  %v1377_v23 = vpop.eup %1376  ;;  %v778_v14 = vpop.xlane.xlu0 %777  ;;  %v1151_v35 = vmax.f32 %v1135_v6, 0.0  ;;  %v878_v18 = vmul.f32 %v1375_v19, %v1971_v8  ;;  %v2094_v62 = vmax.f32 %v841_v22, 1e-12  ;;  %v2096_v40 = vmax.f32 %v985_v51, 1e-12 }
 0x1d8   :  { %v709_v34 = vpop.xlane.xlu1 %708  ;;  %v803_v21 = vmin.f32 %v755_v0, %v778_v14  ;;  %v1029_v44 = vmul.f32 %v1377_v23, %v1973_v11  ;;  %1384 = vrsqrt.f32 %v2042_v24  ;;  %vm900_vm8 = vcmp.eq.f32.partialorder %v2023_v33, inf }
 0x1d9   :  { %v728_v39 = vmax.f32 %v680_v2, %v709_v34  ;;  %1167 = vxpose.xlu1.b32.start [1/16] (narrow) %v1151_v35, 8  ;;  %v979_v60 = vld [vmem:[#allocation4 + $0x20] sm:$0xff]  ;;  %1386 = vrsqrt.f32 %v2044_v20  ;;  %v880_v55 = vsel %vm879_vm1, %v1971_v8, %v878_v18  ;;  %v903_v6 = vand.u32 2147483648, %v2023_v33 }
 0x1da   :  { %v1379_v47 = vpop.eup %1378  ;;  %819 = vst.msk [vmem:[#allocation4 + $0x30] sm:$0xff] %vm30_vm14, %v803_v21  ;;  %v1031_v17 = vsel %vm1030_vm3, %v1973_v11, %v1029_v44  ;;  %v2070_v50 = vmax.f32 %v979_v60, 1e-12  ;;  %v838_v59 = vld [vmem:[#allocation3 + $0x38] sm:$0xff]  ;;  %v883_v11 = vsel %vm881_vm2, %v882_v4, %v880_v55  ;;  %vm902_vm9 = vcmp.eq.f32.partialorder %v2023_v33, 0.0  ;;  %v762_v4 = vld [vmem:[#allocation4 + $0x68] sm:$0xff] }
 0x1db   :  { %745 = vst.msk [vmem:[#allocation3 + $0x60] sm:$0xff] %vm30_vm14, %v728_v39  ;;  %v1381_v52 = vpop.eup %1380  ;;  %v788_v53 = vpop.xlane.xlu0 %787  ;;  %v1022_v28 = vmul.f32 %v1379_v47, %v1995_v5  ;;  %v1034_v58 = vsel %vm1032_vm4, %v1033_v10, %v1031_v17  ;;  %v2110_v15 = vmax.f32 %v838_v59, 1e-12  ;;  %vm893_vm10 = vcmp.eq.f32.partialorder %v2042_v24, inf }
 0x1dc   :  { %v711_v26 = vpop.xlane.xlu1 %710  ;;  %v808_v57 = vmin.f32 %v760_v25, %v788_v53  ;;  %1388 = vrsqrt.f32 %v2070_v50  ;;  %v1122_v37 = vsub.f32 %v890_v54, %v1034_v58  ;;  %vm1065_vm11 = vcmp.eq.f32.partialorder %v1987_v41, inf }
 0x1dd   :  { %v729_v27 = vmax.f32 %v681_v43, %v711_v26  ;;  %1168 = vxpose.xlu1.b32.cont [2/16] (narrow) %v1152_v45, 8  ;;  %v1024_v31 = vsel %vm1023_vm6, %v1995_v5, %v1022_v28  ;;  %v982_v7 = vld [vmem:[#allocation4 + $0x38] sm:$0xff]  ;;  %v2115_v5 = vmul.f32 %v1381_v52, %v1987_v41  ;;  %v1073_v14 = vsel %vm1072_vm5, %v1959_v61, %v1071_v56 }
 0x1de   :  { %v837_v29 = vld [vmem:[#allocation3 + $0x30] sm:$0xff]  ;;  %824 = vst.msk [vmem:[#allocation4 + $0x58] sm:$0xff] %vm30_vm14, %v808_v57  ;;  %v1027_v63 = vsel %vm1025_vm7, %v1026_v9, %v1024_v31  ;;  %v1383_v32 = vpop.eup %1382  ;;  %v2129_v36 = vmax.f32 %v982_v7, 1e-12  ;;  %vm1074_vm13 = vcmp.eq.f32.partialorder %v1959_v61, 0.0  ;;  %vm895_vm15 = vcmp.eq.f32.partialorder %v2042_v24, 0.0 }
 0x1df   :  { %746 = vst.msk [vmem:[#allocation3 + $0x68] sm:$0xff] %vm30_vm14, %v729_v27  ;;  %v2107_v49 = vmax.f32 %v837_v29, 1e-12  ;;  %v790_v0 = vpop.xlane.xlu0 %789  ;;  %v1121_v3 = vsub.f32 %v883_v11, %v1027_v63  ;;  %v899_v35 = vmul.f32 %v1383_v32, %v2023_v33  ;;  %v1138_v43 = vadd.f32 0.3, %v1122_v37 }
 0x1e0   :  { %v715_v2 = vpop.xlane.xlu1 %714  ;;  %v809_v19 = vmin.f32 %v761_v16, %v790_v0  ;;  %v896_v47 = vand.u32 2147483648, %v2042_v24  ;;  %vm1067_vm0 = vcmp.eq.f32.partialorder %v1987_v41, 0.0  ;;  %vm1037_vm1 = vcmp.eq.f32.partialorder %v2070_v50, inf }
 0x1e1   :  { %v731_v8 = vmax.f32 %v683_v48, %v715_v2  ;;  %1390 = vrsqrt.f32 %v2107_v49  ;;  %v1137_v10 = vadd.f32 0.3, %v1121_v3  ;;  %v981_v23 = vld [vmem:[#allocation4 + $0x30] sm:$0xff]  ;;  %vm1044_vm12 = vcmp.eq.f32.partialorder %v2044_v20, inf  ;;  %v764_v48 = vld [vmem:[#allocation4 + $0x78] sm:$0xff] }
 0x1e2   :  { %1392 = vrsqrt.f32 %v2094_v62  ;;  %v1385_v34 = vpop.eup %1384  ;;  %825 = vst.msk [vmem:[#allocation4 + $0x60] sm:$0xff] %vm30_vm14, %v809_v19  ;;  %v2126_v18 = vmax.f32 %v981_v23, 1e-12  ;;  %vm1046_vm2 = vcmp.eq.f32.partialorder %v2044_v20, 0.0  ;;  %vm1039_vm3 = vcmp.eq.f32.partialorder %v2070_v50, 0.0 }
 0x1e3   :  { %748 = vst.msk [vmem:[#allocation3 + $0x78] sm:$0xff] %vm30_vm14, %v731_v8  ;;  %1394 = vrsqrt.f32 %v2110_v15  ;;  %v792_v21 = vpop.xlane.xlu0 %791  ;;  %v1153_v25 = vmax.f32 %v1137_v10, 0.0  ;;  %v892_v44 = vmul.f32 %v1385_v34, %v2042_v24  ;;  %v1387_v45 = vpop.eup %1386  ;;  %v901_v51 = vsel %vm900_vm8, %v2023_v33, %v899_v35 }
 0x1e4   :  { %v713_v39 = vpop.xlane.xlu1 %712  ;;  %v810_v9 = vmin.f32 %v762_v4, %v792_v21  ;;  %1396 = vrsqrt.f32 %v2126_v18  ;;  %v1043_v17 = vmul.f32 %v1387_v45, %v2044_v20  ;;  %v1047_v52 = vand.u32 2147483648, %v2044_v20 }
 0x1e5   :  { %v730_v60 = vmax.f32 %v682_v13, %v713_v39  ;;  %1169 = vxpose.xlu1.b32.cont [3/16] (narrow) %v1153_v25, 8  ;;  %1398 = vrsqrt.f32 %v2129_v36  ;;  %v1154_v26 = vmax.f32 %v1138_v43, 0.0  ;;  %v894_v55 = vsel %vm893_vm10, %v2042_v24, %v892_v44  ;;  %v986_v34 = vld [vmem:[#allocation4 + $0x58] sm:$0xff] }
 0x1e6   :  { %v1389_v22 = vpop.eup %1388  ;;  %826 = vst.msk [vmem:[#allocation4 + $0x68] sm:$0xff] %vm30_vm14, %v810_v9  ;;  %v1045_v56 = vsel %vm1044_vm12, %v2044_v20, %v1043_v17  ;;  %v1040_v27 = vand.u32 2147483648, %v2070_v50  ;;  %vm907_vm4 = vcmp.eq.f32.partialorder %v2107_v49, inf  ;;  %v904_v59 = vsel %vm902_vm9, %v903_v6, %v901_v51  ;;  %v844_v9 = vld [vmem:[#allocation3 + $0x68] sm:$0xff] }
 0x1e7   :  { %747 = vst.msk [vmem:[#allocation3 + $0x70] sm:$0xff] %vm30_vm14, %v730_v60  ;;  %v794_v53 = vpop.xlane.xlu0 %793  ;;  %v1036_v28 = vmul.f32 %v1389_v22, %v2070_v50  ;;  %v1048_v16 = vsel %vm1046_vm2, %v1047_v52, %v1045_v56  ;;  %vm909_vm5 = vcmp.eq.f32.partialorder %v2107_v49, 0.0  ;;  %v910_v31 = vand.u32 2147483648, %v2107_v49 }
 0x1e8   :  { %v811_v57 = vmin.f32 %v763_v1, %v794_v53  ;;  %v897_v54 = vsel %vm895_vm15, %v896_v47, %v894_v55  ;;  %v1124_v11 = vsub.f32 %v904_v59, %v1048_v16  ;;  %v1066_v33 = vsel %vm1065_vm11, %v1987_v41, %v2115_v5 }
 0x1e9   :  { %1170 = vxpose.xlu1.b32.cont [4/16] (narrow) %v1154_v26, 8  ;;  %v1038_v58 = vsel %vm1037_vm1, %v2070_v50, %v1036_v28  ;;  %vm914_vm6 = vcmp.eq.f32.partialorder %v2110_v15, inf  ;;  %v1076_v24 = vsel %vm1074_vm13, %v1075_v42, %v1073_v14  ;;  %vm1051_vm7 = vcmp.eq.f32.partialorder %v2126_v18, inf  ;;  %v987_v25 = vld [vmem:[#allocation4 + $0x60] sm:$0xff] }
 0x1ea   :  { %827 = vst.msk [vmem:[#allocation4 + $0x70] sm:$0xff] %vm30_vm14, %v811_v57  ;;  %v1041_v29 = vsel %vm1039_vm3, %v1040_v27, %v1038_v58  ;;  %vm1053_vm8 = vcmp.eq.f32.partialorder %v2126_v18, 0.0  ;;  %vm916_vm9 = vcmp.eq.f32.partialorder %v2110_v15, 0.0  ;;  %v1054_v6 = vand.u32 2147483648, %v2126_v18  ;;  %v846_v59 = vld [vmem:[#allocation3 + $0x78] sm:$0xff] }
 0x1eb   :  { %v1391_v20 = vpop.eup %1390  ;;  %v796_v32 = vpop.xlane.xlu0 %795  ;;  %v1123_v0 = vsub.f32 %v897_v54, %v1041_v29  ;;  %v1069_v19 = vsel %vm1067_vm0, %v1068_v46, %v1066_v33  ;;  %v1140_v42 = vadd.f32 0.3, %v1124_v11  ;;  %v917_v8 = vand.u32 2147483648, %v2110_v15 }
 0x1ec   :  { %v1393_v63 = vpop.eup %1392  ;;  %v906_v2 = vmul.f32 %v1391_v20, %v2107_v49  ;;  %v812_v3 = vmin.f32 %v764_v48, %v796_v32  ;;  %vm1058_vm10 = vcmp.eq.f32.partialorder %v2129_v36, inf  ;;  %v1128_v5 = vsub.f32 %v2054_v38, %v1076_v24  ;;  %v843_v38 = vld [vmem:[#allocation3 + $0x60] sm:$0xff] }
 0x1ed   :  { %v1395_v50 = vpop.eup %1394  ;;  %v1139_v37 = vadd.f32 0.3, %v1123_v0  ;;  %1400 = vrsqrt.f32 %v2096_v40  ;;  %vm1060_vm11 = vcmp.eq.f32.partialorder %v2129_v36, 0.0  ;;  %v1061_v46 = vand.u32 2147483648, %v2129_v36  ;;  %v988_v22 = vld [vmem:[#allocation4 + $0x68] sm:$0xff] }
 0x1ee   :  { %v913_v7 = vmul.f32 %v1395_v50, %v2110_v15  ;;  %v1397_v61 = vpop.eup %1396  ;;  %828 = vst.msk [vmem:[#allocation4 + $0x78] sm:$0xff] %vm30_vm14, %v812_v3  ;;  %v908_v13 = vsel %vm907_vm4, %v2107_v49, %v906_v2  ;;  %v1127_v23 = vsub.f32 %v2081_v12, %v1069_v19  ;;  %v934_v14 = vmul.f32 %v1393_v63, %v2094_v62  ;;  %v845_v57 = vld [vmem:[#allocation3 + $0x70] sm:$0xff] }
 0x1ef   :  { %v1155_v4 = vmax.f32 %v1139_v37, 0.0  ;;  %v1050_v10 = vmul.f32 %v1397_v61, %v2126_v18  ;;  %v1399_v41 = vpop.eup %1398  ;;  %1402 = vrsqrt.f32 %v2013_v30  ;;  %v1156_v43 = vmax.f32 %v1140_v42, 0.0 }
 0x1f0   :  { %v915_v21 = vsel %vm914_vm6, %v2110_v15, %v913_v7  ;;  %v1057_v39 = vmul.f32 %v1399_v41, %v2129_v36  ;;  %v911_v12 = vsel %vm909_vm5, %v910_v31, %v908_v13  ;;  %v2212_v45 = vadd.f32 0.3, %v1128_v5 }
 0x1f1   :  { %1171 = vxpose.xlu1.b32.cont [5/16] (narrow) %v1155_v4, 8  ;;  %v1052_v35 = vsel %vm1051_vm7, %v2126_v18, %v1050_v10  ;;  %v2217_v1 = vmax.f32 %v986_v34, 1e-12  ;;  %v2219_v17 = vmax.f32 %v843_v38, 1e-12  ;;  %v918_v49 = vsel %vm916_vm9, %v917_v8, %v915_v21  ;;  %v989_v27 = vld [vmem:[#allocation4 + $0x70] sm:$0xff] }
 0x1f2   :  { %v1055_v44 = vsel %vm1053_vm8, %v1054_v6, %v1052_v35  ;;  %v1059_v47 = vsel %vm1058_vm10, %v2129_v36, %v1057_v39  ;;  %v1143_v51 = vadd.f32 0.3, %v1127_v23  ;;  %v2225_v52 = vmax.f32 %v987_v25, 1e-12 }
 0x1f3   :  { %v1125_v60 = vsub.f32 %v911_v12, %v1055_v44  ;;  %v1062_v18 = vsel %vm1060_vm11, %v1061_v46, %v1059_v47  ;;  %1404 = vrsqrt.f32 %v2217_v1  ;;  %v2228_v55 = vmax.f32 %v844_v9, 1e-12 }
 0x1f4   :  { %v1126_v26 = vsub.f32 %v918_v49, %v1062_v18  ;;  %1406 = vrsqrt.f32 %v2219_v17  ;;  %v2231_v28 = vmax.f32 %v988_v22, 1e-12  ;;  %vm935_vm14 = vcmp.eq.f32.partialorder %v2094_v62, inf }
 0x1f5   :  { %1172 = vxpose.xlu1.b32.cont [6/16] (narrow) %v1156_v43, 8  ;;  %v1141_v53 = vadd.f32 0.3, %v1125_v60  ;;  %v936_v36 = vsel %vm935_vm14, %v2094_v62, %v934_v14  ;;  %1408 = vrsqrt.f32 %v2225_v52  ;;  %v1159_v48 = vmax.f32 %v1143_v51, 0.0  ;;  %v990_v54 = vld [vmem:[#allocation4 + $0x78] sm:$0xff] }
 0x1f6   :  { %v1142_v15 = vadd.f32 0.3, %v1126_v26  ;;  %v1160_v58 = vmax.f32 %v2212_v45, 0.0  ;;  %vm937_vm13 = vcmp.eq.f32.partialorder %v2094_v62, 0.0  ;;  %1410 = vrsqrt.f32 %v2228_v55 }
 0x1f7   :  { %v1157_v56 = vmax.f32 %v1141_v53, 0.0  ;;  %v1401_v16 = vpop.eup %1400  ;;  %v938_v31 = vand.u32 2147483648, %v2094_v62  ;;  %vm1079_vm15 = vcmp.eq.f32.partialorder %v2096_v40, inf  ;;  %1412 = vrsqrt.f32 %v2231_v28 }
 0x1f8   :  { %v1078_v20 = vmul.f32 %v1401_v16, %v2096_v40  ;;  %v1158_v11 = vmax.f32 %v1142_v15, 0.0  ;;  %v1082_v33 = vand.u32 2147483648, %v2096_v40  ;;  %v2244_v63 = vmax.f32 %v845_v57, 1e-12 }
 0x1f9   :  { %1173 = vxpose.xlu1.b32.cont [7/16] (narrow) %v1157_v56, 8  ;;  %v1403_v29 = vpop.eup %1402  ;;  %v2246_v32 = vmax.f32 %v989_v27, 1e-12  ;;  %vm1081_vm0 = vcmp.eq.f32.partialorder %v2096_v40, 0.0  ;;  %v2251_v24 = vmax.f32 %v846_v59, 1e-12  ;;  %v939_v50 = vsel %vm937_vm13, %v938_v31, %v936_v36 }
 0x1fa   :  { %v1080_v0 = vsel %vm1079_vm15, %v2096_v40, %v1078_v20  ;;  %v941_v2 = vmul.f32 %v1403_v29, %v2013_v30  ;;  %1414 = vrsqrt.f32 %v2244_v63  ;;  %v2256_v37 = vmax.f32 %v990_v54, 1e-12 }
 0x1fb   :  { %v1083_v3 = vsel %vm1081_vm0, %v1082_v33, %v1080_v0  ;;  %vm942_vm1 = vcmp.eq.f32.partialorder %v2013_v30, inf  ;;  %vm944_vm12 = vcmp.eq.f32.partialorder %v2013_v30, 0.0  ;;  %v945_v6 = vand.u32 2147483648, %v2013_v30 }
 0x1fc   :  { %1416 = vrsqrt.f32 %v2246_v32  ;;  %v1129_v7 = vsub.f32 %v939_v50, %v1083_v3  ;;  %v943_v19 = vsel %vm942_vm1, %v2013_v30, %v941_v2  ;;  %vm1086_vm2 = vcmp.eq.f32.partialorder %v2217_v1, inf }
 0x1fd   :  { %1174 = vxpose.xlu1.b32.cont [8/16] (narrow) %v1158_v11, 8  ;;  %v1405_v40 = vpop.eup %1404  ;;  %vm1088_vm3 = vcmp.eq.f32.partialorder %v2217_v1, 0.0  ;;  %v1089_v42 = vand.u32 2147483648, %v2217_v1  ;;  %vm949_vm4 = vcmp.eq.f32.partialorder %v2219_v17, inf  ;;  %1418 = vrsqrt.f32 %v2251_v24 }
 0x1fe   :  { %v1407_v62 = vpop.eup %1406  ;;  %v1085_v61 = vmul.f32 %v1405_v40, %v2217_v1  ;;  %vm951_vm5 = vcmp.eq.f32.partialorder %v2219_v17, 0.0  ;;  %v952_v5 = vand.u32 2147483648, %v2219_v17  ;;  %1420 = vrsqrt.f32 %v2256_v37 }
 0x1ff   :  { %v948_v8 = vmul.f32 %v1407_v62, %v2219_v17  ;;  %v1409_v4 = vpop.eup %1408  ;;  %v946_v13 = vsel %vm944_vm12, %v945_v6, %v943_v19  ;;  %vm1093_vm6 = vcmp.eq.f32.partialorder %v2225_v52, inf  ;;  %vm1095_vm7 = vcmp.eq.f32.partialorder %v2225_v52, 0.0 }
 0x200   :  { %v1087_v10 = vsel %vm1086_vm2, %v2217_v1, %v1085_v61  ;;  %v1411_v41 = vpop.eup %1410  ;;  %v1145_v46 = vadd.f32 0.3, %v1129_v7  ;;  %v1092_v34 = vmul.f32 %v1409_v4, %v2225_v52  ;;  %v1096_v30 = vand.u32 2147483648, %v2225_v52 }
 0x201   :  { %1175 = vxpose.xlu1.b32.cont [9/16] (narrow) %v1159_v48, 8  ;;  %v1090_v23 = vsel %vm1088_vm3, %v1089_v42, %v1087_v10  ;;  %v950_v14 = vsel %vm949_vm4, %v2219_v17, %v948_v8  ;;  %v1413_v38 = vpop.eup %1412  ;;  %v955_v21 = vmul.f32 %v1411_v41, %v2228_v55  ;;  %vm956_vm8 = vcmp.eq.f32.partialorder %v2228_v55, inf }
 0x202   :  { %v1130_v35 = vsub.f32 %v946_v13, %v1090_v23  ;;  %v1094_v39 = vsel %vm1093_vm6, %v2225_v52, %v1092_v34  ;;  %v1099_v25 = vmul.f32 %v1413_v38, %v2231_v28  ;;  %vm1100_vm9 = vcmp.eq.f32.partialorder %v2231_v28, inf }
 0x203   :  { %vm1102_vm10 = vcmp.eq.f32.partialorder %v2231_v28, 0.0  ;;  %v953_v12 = vsel %vm951_vm5, %v952_v5, %v950_v14  ;;  %v1097_v44 = vsel %vm1095_vm7, %v1096_v30, %v1094_v39  ;;  %v1103_v45 = vand.u32 2147483648, %v2231_v28 }
 0x204   :  { %v1146_v43 = vadd.f32 0.3, %v1130_v35  ;;  %v1415_v9 = vpop.eup %1414  ;;  %v1161_v60 = vmax.f32 %v1145_v46, 0.0  ;;  %v1131_v47 = vsub.f32 %v953_v12, %v1097_v44  ;;  %v957_v1 = vsel %vm956_vm8, %v2228_v55, %v955_v21 }
 0x205   :  { %1176 = vxpose.xlu1.b32.cont [10/16] (narrow) %v1160_v58, 8  ;;  %v1101_v22 = vsel %vm1100_vm9, %v2231_v28, %v1099_v25  ;;  %v959_v18 = vand.u32 2147483648, %v2228_v55  ;;  %v962_v53 = vmul.f32 %v1415_v9, %v2244_v63  ;;  %vm958_vm11 = vcmp.eq.f32.partialorder %v2228_v55, 0.0 }
 0x206   :  { %v1417_v49 = vpop.eup %1416  ;;  %v1104_v51 = vsel %vm1102_vm10, %v1103_v45, %v1101_v22  ;;  %vm963_vm14 = vcmp.eq.f32.partialorder %v2244_v63, inf  ;;  %vm1107_vm13 = vcmp.eq.f32.partialorder %v2246_v32, inf  ;;  %v1162_v26 = vmax.f32 %v1146_v43, 0.0 }
 0x207   :  { %v1106_v17 = vmul.f32 %v1417_v49, %v2246_v32  ;;  %v1419_v52 = vpop.eup %1418  ;;  %v960_v56 = vsel %vm958_vm11, %v959_v18, %v957_v1  ;;  %vm1109_vm15 = vcmp.eq.f32.partialorder %v2246_v32, 0.0  ;;  %v1110_v28 = vand.u32 2147483648, %v2246_v32 }
 0x208   :  { %v1421_v15 = vpop.eup %1420  ;;  %v1147_v36 = vadd.f32 0.3, %v1131_v47  ;;  %v1132_v57 = vsub.f32 %v960_v56, %v1104_v51  ;;  %v964_v27 = vsel %vm963_vm14, %v2244_v63, %v962_v53  ;;  %v966_v16 = vand.u32 2147483648, %v2244_v63 }
 0x209   :  { %1177 = vxpose.xlu1.b32.cont [11/16] (narrow) %v1161_v60, 8  ;;  %v1108_v55 = vsel %vm1107_vm13, %v2246_v32, %v1106_v17  ;;  %v969_v58 = vmul.f32 %v1419_v52, %v2251_v24  ;;  %v1113_v59 = vmul.f32 %v1421_v15, %v2256_v37  ;;  %vm965_vm0 = vcmp.eq.f32.partialorder %v2244_v63, 0.0 }
 0x20a   :  { %v1111_v48 = vsel %vm1109_vm15, %v1110_v28, %v1108_v55  ;;  %vm970_vm1 = vcmp.eq.f32.partialorder %v2251_v24, inf  ;;  %vm1114_vm12 = vcmp.eq.f32.partialorder %v2256_v37, inf  ;;  %v967_v31 = vsel %vm965_vm0, %v966_v16, %v964_v27 }
 0x20b   :  { %v1115_v20 = vsel %vm1114_vm12, %v2256_v37, %v1113_v59  ;;  %vm1116_vm2 = vcmp.eq.f32.partialorder %v2256_v37, 0.0  ;;  %v1117_v54 = vand.u32 2147483648, %v2256_v37  ;;  %v1163_v29 = vmax.f32 %v1147_v36, 0.0 }
 0x20c   :  { %v1148_v11 = vadd.f32 0.3, %v1132_v57  ;;  %v1133_v33 = vsub.f32 %v967_v31, %v1111_v48  ;;  %v971_v32 = vsel %vm970_vm1, %v2251_v24, %v969_v58  ;;  %v973_v0 = vand.u32 2147483648, %v2251_v24 }
 0x20d   :  { %1178 = vxpose.xlu1.b32.cont [12/16] (narrow) %v1162_v26, 8  ;;  %v1118_v2 = vsel %vm1116_vm2, %v1117_v54, %v1115_v20  ;;  %vm972_vm3 = vcmp.eq.f32.partialorder %v2251_v24, 0.0 }
 0x20e   :  { %v974_v63 = vsel %vm972_vm3, %v973_v0, %v971_v32  ;;  %v1164_v50 = vmax.f32 %v1148_v11, 0.0  ;;  %v1149_v3 = vadd.f32 0.3, %v1133_v33 }
 0x20f   :  { %v1134_v6 = vsub.f32 %v974_v63, %v1118_v2 }
 0x210   :  { %v1165_v40 = vmax.f32 %v1149_v3, 0.0 }
 0x211   :  { %1179 = vxpose.xlu1.b32.cont [13/16] (narrow) %v1163_v29, 8  ;;  %v1150_v7 = vadd.f32 0.3, %v1134_v6 }
 0x213   :  { %v1166_v37 = vmax.f32 %v1150_v7, 0.0 }
 0x215   :  { %1180 = vxpose.xlu1.b32.cont [14/16] (narrow) %v1164_v50, 8 }
 0x219   :  { %1181 = vxpose.xlu1.b32.cont [15/16] (narrow) %v1165_v40, 8 }
 0x21d   :  { %1182 = vxpose.xlu1.b32.end [16/16] (narrow) %v1166_v37, 8 }
 0x261   :  { %v1183_v19 = vpop.trf.xlu1 }
 0x262   :  { %1199 = vst [vmem:[#allocation5] sm:$0x1] %v1183_v19 }
 0x263   :  { %1433 = shalt.err (!%p1430_p4)
}
 0x264   :  { %s1434_s7 = scalar_lea.hbm %s2336_s6, 16 }
 0x265   :  { %p1435_p5 = scmp.ne.s32.totalorder %s2336_s6, %s1434_s7  ;;  %p1438_p6 = scmp.lt.u32.totalorder %s1434_s7, %s2336_s6 }
 0x267   :  { %p1440_p7 = pnand %p1438_p6, %p1435_p5 }
 0x269   :  { %1443 = shalt.err (!%p1440_p7)
}
 0x26a   :  { %1209 = dma.vmem_to_hbm [thread:$0]  %s1207_s5, 16, %s2336_s6, [#allocation6]  }
 0x26b   :  { %1444 = dma.done.wait [#allocation6], 16  }
 0x26c   :  { %1445 = vsyncadd [#allocation6], 4294967280 }
 0x26d   :  { %1213 = vsyncpa [#allocation6], 1 }

</bundles_post_ra>
